<compile_context>
chip_gen: v7x
topology: tpu7x:2x2x1
jax: 0.10.0
libtpu: 0.0.40
codegen_flags: <defaults>
</compile_context>

<pallas_src>
import jax
import jax.numpy as jnp
from jax.experimental import pallas as pl
from jax.experimental.pallas import tpu as pltpu

C = 3.0


def eqnn_kernel(t_ref, w_ref, w1t_ref, w1w_ref, beff_ref, w2_ref, b2_ref,
                w3_ref, h_ref):
    t = t_ref[...]                       # (1, TILE_N)  samples on the lane axis
    w = w_ref[...]                       # (1, TILE_N)

    # Layer 1 without materializing the concat: (H,1)*(1,TILE_N) broadcasts.
    # The constant In1 = ein contribution is already folded into beff.
    h = jnp.sin(w1t_ref[...] * t + w1w_ref[...] * w + beff_ref[...])  # (H, TILE_N)

    # Layer 2 on the MXU: (H,H) @ (H,TILE_N) + b2.
    h = jnp.sin(jnp.dot(w2_ref[...], h, preferred_element_type=jnp.float32)
                + b2_ref[...])                                        # (H, TILE_N)

    # Layer 3 (no bias): (1,H) @ (H,TILE_N).
    h_ref[...] = jnp.sin(jnp.dot(w3_ref[...], h,
                                 preferred_element_type=jnp.float32))  # (1, TILE_N)


def eqnn_forward(t, w, params, tile_n=1024):
    """t, w: (N, 1) float32.  Returns (h: (N,1), E: (N,1))."""
    N = t.shape[0]
    H = params["w2"].shape[0]

    # Lane-align N and pick a tile size safe on every generation's VMEM.
    n_lane = ((N + 127) // 128) * 128
    TILE_N = min(tile_n, n_lane)
    Np = pl.cdiv(n_lane, TILE_N) * TILE_N
    grid = (Np // TILE_N,)

    tp = jnp.pad(t.astype(jnp.float32).reshape(1, N), ((0, 0), (0, Np - N)))
    wp = jnp.pad(w.astype(jnp.float32).reshape(1, N), ((0, 0), (0, Np - N)))

    # Hoist constant parameter math out of the kernel (done once, not per tile).
    ein = params["ein"][0, 0]
    w1 = params["w1"]                                      # (H, 3) (out, in)
    w1t = w1[:, 0:1]                                       # (H, 1)  coeff of t
    w1w = w1[:, 1:2]                                       # (H, 1)  coeff of w
    b_eff = params["b1"] + ein * w1[:, 2:3]                # (H, 1)  bias + ein term

    tile_spec = pl.BlockSpec((1, TILE_N), lambda i: (0, i))
    resident = lambda shape: pl.BlockSpec(shape, lambda i: (0, 0))

    cost = pl.CostEstimate(
        flops=int(2 * H * H * Np + 2 * H * Np + 6 * H * Np),
        transcendentals=int((2 * H + 1) * Np),
        bytes_accessed=int(4 * (3 * Np + H * H + 4 * H)),
    )

    h_pad = pl.pallas_call(
        eqnn_kernel,
        out_shape=jax.ShapeDtypeStruct((1, Np), jnp.float32),
        grid=grid,
        in_specs=[
            tile_spec,             # t tile (lane-dense)
            tile_spec,             # w tile (lane-dense)
            resident((H, 1)),      # W1[:, t]
            resident((H, 1)),      # W1[:, w]
            resident((H, 1)),      # b_eff = b1 + ein*W1[:, In1]
            resident((H, H)),      # W2 (out, in)
            resident((H, 1)),      # b2
            resident((1, H)),      # W3 (out, in)
        ],
        out_specs=tile_spec,
        compiler_params=pltpu.CompilerParams(
            dimension_semantics=("parallel",)),
        cost_estimate=cost,
    )(tp, wp, w1t, w1w, b_eff, params["w2"], params["b2"], params["w3"])

    # Slice the lane padding back off; padded lanes never leak to the caller.
    h = h_pad[0, :N].reshape(N, 1)
    # E = C*|In1| is constant over N -> no kernel work, just a fill.
    E = jnp.full((N, 1), C * jnp.abs(ein), dtype=jnp.float32)
    return h, E


def init_params(key, hidden_dim):
    """PyTorch-style Linear init (U[-1/sqrt(fan_in), 1/sqrt(fan_in)]),
    weights stored in PyTorch (out, in) orientation."""
    k1, k2, k3, k4, k5, k6 = jax.random.split(key, 6)
    u = lambda k, shape, fan_in: jax.random.uniform(
        k, shape, jnp.float32, -1.0 / jnp.sqrt(fan_in), 1.0 / jnp.sqrt(fan_in))
    return {
        "w1": u(k1, (hidden_dim, 3), 3.0),                          # linear1.weight
        "b1": u(k2, (hidden_dim, 1), 3.0),                          # linear1.bias
        "w2": u(k3, (hidden_dim, hidden_dim), float(hidden_dim)),   # linear2.weight
        "b2": u(k4, (hidden_dim, 1), float(hidden_dim)),            # linear2.bias
        "w3": u(k5, (1, hidden_dim), float(hidden_dim)),            # linear3.weight (no bias)
        "ein": u(k6, (1, 1), 1.0),                                  # Ein.weight
    }


def eqnn_reference(t, w, p):
    """Pure-JAX reference matching the PyTorch forward (t, w as (N,1))."""
    in1 = jnp.ones_like(t) * p["ein"][0, 0]
    x = jnp.concatenate([t, w, in1], axis=-1)                # (N, 3)
    h = jnp.sin(x @ p["w1"].T + p["b1"].T)
    h = jnp.sin(h @ p["w2"].T + p["b2"].T)
    h = jnp.sin(h @ p["w3"].T)
    return h, C * jnp.abs(in1)


if __name__ == "__main__":
    N = 100          # n_train in the original script
    hidden_dim = 32

    key = jax.random.PRNGKey(0)
    params = init_params(key, hidden_dim)

    # t = linspace(0, 1, N), w = linspace(0, sqrt(2), N), as (N, 1) columns.
    t = jnp.linspace(0.0, 1.0, N, dtype=jnp.float32).reshape(N, 1)
    w = jnp.linspace(0.0, jnp.sqrt(2.0), N, dtype=jnp.float32).reshape(N, 1)

    h, E = eqnn_forward(t, w, params)
    jax.block_until_ready((h, E))

    h_ref, E_ref = eqnn_reference(t, w, params)
    assert jnp.allclose(h, h_ref, atol=1e-5, rtol=1e-5)
    assert jnp.allclose(E, E_ref, atol=1e-5, rtol=1e-5)

    print("KERNEL_OK")
</pallas_src>

<mosaic_0001>
module attributes {stable_mosaic.version = 11 : i64} {
  func.func @eqnn_kernel(%arg0: i32, %arg1: memref<1x128xf32, #tpu.memory_space<vmem>>, %arg2: memref<1x128xf32, #tpu.memory_space<vmem>>, %arg3: memref<32x1xf32, #tpu.memory_space<vmem>>, %arg4: memref<32x1xf32, #tpu.memory_space<vmem>>, %arg5: memref<32x1xf32, #tpu.memory_space<vmem>>, %arg6: memref<32x32xf32, #tpu.memory_space<vmem>>, %arg7: memref<32x1xf32, #tpu.memory_space<vmem>>, %arg8: memref<1x32xf32, #tpu.memory_space<vmem>>, %arg9: memref<1x128xf32, #tpu.memory_space<vmem>>) attributes {dimension_semantics = [#tpu.dimension_semantics<parallel>], iteration_bounds = array<i64: 1>, scalar_prefetch = 0 : i64, scratch_operands = 0 : i64, tpu.core_type = #tpu.core_type<tc>, window_params = [{transform_indices = @transform_0, window_bounds = array<i64: 1, 128>}, {transform_indices = @transform_1, window_bounds = array<i64: 1, 128>}, {pipeline_mode = #tpu.pipeline_mode<synchronous>, transform_indices = @transform_2, window_bounds = array<i64: 32, 1>}, {pipeline_mode = #tpu.pipeline_mode<synchronous>, transform_indices = @transform_3, window_bounds = array<i64: 32, 1>}, {pipeline_mode = #tpu.pipeline_mode<synchronous>, transform_indices = @transform_4, window_bounds = array<i64: 32, 1>}, {pipeline_mode = #tpu.pipeline_mode<synchronous>, transform_indices = @transform_5, window_bounds = array<i64: 32, 32>}, {pipeline_mode = #tpu.pipeline_mode<synchronous>, transform_indices = @transform_6, window_bounds = array<i64: 32, 1>}, {pipeline_mode = #tpu.pipeline_mode<synchronous>, transform_indices = @transform_7, window_bounds = array<i64: 1, 32>}, {transform_indices = @transform_8, window_bounds = array<i64: 1, 128>}]} {
    %c0 = arith.constant 0 : index
    %c0_0 = arith.constant 0 : index
    %0 = vector.load %arg1[%c0, %c0_0] : memref<1x128xf32, #tpu.memory_space<vmem>>, vector<1x128xf32>
    %c0_1 = arith.constant 0 : index
    %c0_2 = arith.constant 0 : index
    %1 = vector.load %arg2[%c0_1, %c0_2] : memref<1x128xf32, #tpu.memory_space<vmem>>, vector<1x128xf32>
    %c0_3 = arith.constant 0 : index
    %c0_4 = arith.constant 0 : index
    %2 = vector.load %arg3[%c0_3, %c0_4] : memref<32x1xf32, #tpu.memory_space<vmem>>, vector<32x1xf32>
    %3 = vector.broadcast %2 : vector<32x1xf32> to vector<32x128xf32>
    %4 = vector.broadcast %0 : vector<1x128xf32> to vector<32x128xf32>
    %5 = arith.mulf %3, %4 : vector<32x128xf32>
    %c0_5 = arith.constant 0 : index
    %c0_6 = arith.constant 0 : index
    %6 = vector.load %arg4[%c0_5, %c0_6] : memref<32x1xf32, #tpu.memory_space<vmem>>, vector<32x1xf32>
    %7 = vector.broadcast %6 : vector<32x1xf32> to vector<32x128xf32>
    %8 = vector.broadcast %1 : vector<1x128xf32> to vector<32x128xf32>
    %9 = arith.mulf %7, %8 : vector<32x128xf32>
    %10 = arith.addf %5, %9 : vector<32x128xf32>
    %c0_7 = arith.constant 0 : index
    %c0_8 = arith.constant 0 : index
    %11 = vector.load %arg5[%c0_7, %c0_8] : memref<32x1xf32, #tpu.memory_space<vmem>>, vector<32x1xf32>
    %12 = vector.broadcast %11 : vector<32x1xf32> to vector<32x128xf32>
    %13 = arith.addf %10, %12 : vector<32x128xf32>
    %14 = math.sin %13 : vector<32x128xf32>
    %c0_9 = arith.constant 0 : index
    %c0_10 = arith.constant 0 : index
    %15 = vector.load %arg6[%c0_9, %c0_10] : memref<32x32xf32, #tpu.memory_space<vmem>>, vector<32x32xf32>
    %cst = arith.constant dense<0.000000e+00> : vector<32x128xf32>
    %16 = tpu.matmul %15, %14, %cst {dimension_numbers = #tpu.dot_dimension_numbers<[1], [0], [0], [1], [0, 0, 1, 1], [], []>} : vector<32x32xf32>, vector<32x128xf32>, vector<32x128xf32> -> vector<32x128xf32>
    %c0_11 = arith.constant 0 : index
    %c0_12 = arith.constant 0 : index
    %17 = vector.load %arg7[%c0_11, %c0_12] : memref<32x1xf32, #tpu.memory_space<vmem>>, vector<32x1xf32>
    %18 = vector.broadcast %17 : vector<32x1xf32> to vector<32x128xf32>
    %19 = arith.addf %16, %18 : vector<32x128xf32>
    %20 = math.sin %19 : vector<32x128xf32>
    %c0_13 = arith.constant 0 : index
    %c0_14 = arith.constant 0 : index
    %21 = vector.load %arg8[%c0_13, %c0_14] : memref<1x32xf32, #tpu.memory_space<vmem>>, vector<1x32xf32>
    %cst_15 = arith.constant dense<0.000000e+00> : vector<1x128xf32>
    %22 = tpu.matmul %21, %20, %cst_15 {dimension_numbers = #tpu.dot_dimension_numbers<[1], [0], [0], [1], [0, 0, 1, 1], [], []>} : vector<1x32xf32>, vector<32x128xf32>, vector<1x128xf32> -> vector<1x128xf32>
    %23 = math.sin %22 : vector<1x128xf32>
    %c0_16 = arith.constant 0 : index
    %c0_17 = arith.constant 0 : index
    %24 = vector.load %arg9[%c0_16, %c0_17] : memref<1x128xf32, #tpu.memory_space<vmem>>, vector<1x128xf32>
    tpu.vector_store %arg9[%c0_16, %c0_17], %23 {strides = array<i32>} : memref<1x128xf32, #tpu.memory_space<vmem>>, vector<1x128xf32>,
    return
  }
  func.func @transform_0(%arg0: i32) -> (i32, i32) {
    %c0_i32 = arith.constant 0 : i32
    %c0_i32_0 = arith.constant 0 : i32
    return %c0_i32, %arg0 : i32, i32
  }
  func.func @transform_1(%arg0: i32) -> (i32, i32) {
    %c0_i32 = arith.constant 0 : i32
    %c0_i32_0 = arith.constant 0 : i32
    return %c0_i32, %arg0 : i32, i32
  }
  func.func @transform_2(%arg0: i32) -> (i32, i32) {
    %c0_i32 = arith.constant 0 : i32
    %c0_i32_0 = arith.constant 0 : i32
    %c0_i32_1 = arith.constant 0 : i32
    return %c0_i32, %c0_i32_0 : i32, i32
  }
  func.func @transform_3(%arg0: i32) -> (i32, i32) {
    %c0_i32 = arith.constant 0 : i32
    %c0_i32_0 = arith.constant 0 : i32
    %c0_i32_1 = arith.constant 0 : i32
    return %c0_i32, %c0_i32_0 : i32, i32
  }
  func.func @transform_4(%arg0: i32) -> (i32, i32) {
    %c0_i32 = arith.constant 0 : i32
    %c0_i32_0 = arith.constant 0 : i32
    %c0_i32_1 = arith.constant 0 : i32
    return %c0_i32, %c0_i32_0 : i32, i32
  }
  func.func @transform_5(%arg0: i32) -> (i32, i32) {
    %c0_i32 = arith.constant 0 : i32
    %c0_i32_0 = arith.constant 0 : i32
    %c0_i32_1 = arith.constant 0 : i32
    return %c0_i32, %c0_i32_0 : i32, i32
  }
  func.func @transform_6(%arg0: i32) -> (i32, i32) {
    %c0_i32 = arith.constant 0 : i32
    %c0_i32_0 = arith.constant 0 : i32
    %c0_i32_1 = arith.constant 0 : i32
    return %c0_i32, %c0_i32_0 : i32, i32
  }
  func.func @transform_7(%arg0: i32) -> (i32, i32) {
    %c0_i32 = arith.constant 0 : i32
    %c0_i32_0 = arith.constant 0 : i32
    %c0_i32_1 = arith.constant 0 : i32
    return %c0_i32, %c0_i32_0 : i32, i32
  }
  func.func @transform_8(%arg0: i32) -> (i32, i32) {
    %c0_i32 = arith.constant 0 : i32
    %c0_i32_0 = arith.constant 0 : i32
    return %c0_i32, %arg0 : i32, i32
  }
}

</mosaic_0001>

<bundles_post_ra>
// kernel: tpu_custom_call.1
= control target key start
LH: loop header
LB: loop body
LE: loop exit
PB: predicated region body
PF: predicated region fallthrough
CT: control target
= control target key end

     0   :  { %v1487_v2 = vmov 0   ;;  %s2249_s0 = inlined_call_operand.vmem [shape: f32[1,128], index: 0, kind: input, shape index: {}]   ;;  %s2250_s1 = inlined_call_operand.vmem [shape: f32[1,128], index: 1, kind: input, shape index: {}]   ;;  %s2251_s2 = inlined_call_operand.vmem [shape: f32[32,1], index: 2, kind: input, shape index: {}]   ;;  %s2252_s3 = inlined_call_operand.vmem [shape: f32[32,1], index: 3, kind: input, shape index: {}]   ;;  %s2253_s4 = inlined_call_operand.vmem [shape: f32[32,1], index: 4, kind: input, shape index: {}]   ;;  %s2254_s5 = inlined_call_operand.vmem [shape: f32[32,32], index: 5, kind: input, shape index: {}]   ;;  %s2255_s6 = inlined_call_operand.vmem [shape: f32[32,1], index: 6, kind: input, shape index: {}]   ;;  %s2256_s7 = inlined_call_operand.vmem [shape: f32[1,32], index: 7, kind: input, shape index: {}]   ;;  %s2257_s8 = inlined_call_operand.hbm [shape: f32[1,128], index: 8, kind: output, shape index: {}]  }
   0x1   :  { %v66_v0 = vld [vmem:[%s2252_s3] sm:$0xff]  ;;  %1426 = vset.pattern.permute.xlu1 %v1487_v2  ;;  %1425 = vset.pattern.permute.xlu0 %v1487_v2  ;;  %v67_v3 = vld [vmem:[%s2252_s3 + $0x8] sm:$0xff] }
   0x2   :  { %v32_v1 = vld [vmem:[%s2251_s2] sm:$0xff]  ;;  %72 = vperm.xlu1 %1426, %v66_v0   ;;  %v33_v4 = vld [vmem:[%s2251_s2 + $0x8] sm:$0xff] }
   0x3   :  { %38 = vperm.xlu0 %1425, %v32_v1  }
   0x6   :  { %77 = vperm.xlu1 %1426, %v67_v3  }
   0x7   :  { %43 = vperm.xlu0 %1425, %v33_v4  }
   0x8   :  { %13 = vsyncpa [#allocation3], 0  ;;  %v35_v5 = vld [vmem:[%s2251_s2 + $0x18] sm:$0xff]  ;;  %v34_v6 = vld [vmem:[%s2251_s2 + $0x10] sm:$0xff]  ;;  %vm576_vm12 = vcmask 261120  }
   0x9   :  { %v69_v7 = vld [vmem:[%s2252_s3 + $0x18] sm:$0xff]  ;;  %v68_v8 = vld [vmem:[%s2252_s3 + $0x10] sm:$0xff]  ;;  %v105_v9 = vld [vmem:[%s2253_s4 + $0x8] sm:$0xff] }
   0xa   :  { %53 = vperm.xlu1 %1426, %v35_v5   ;;  %v104_v10 = vld [vmem:[%s2253_s4] sm:$0xff]  ;;  %v107_v11 = vld [vmem:[%s2253_s4 + $0x18] sm:$0xff]  ;;  %v106_v12 = vld [vmem:[%s2253_s4 + $0x10] sm:$0xff] }
   0xb   :  { %48 = vperm.xlu0 %1425, %v34_v6   ;;  %v553_v13 = vld [vmem:[%s2255_s6 + $0x8] sm:$0xff]  ;;  %v552_v14 = vld [vmem:[%s2255_s6] sm:$0xff]  ;;  %v555_v15 = vld [vmem:[%s2255_s6 + $0x18] sm:$0xff] }
   0xc   :  { %v554_v16 = vld [vmem:[%s2255_s6 + $0x10] sm:$0xff]  ;;  %v1284_v21 = vld [vmem:[%s2250_s1] ss:$0 sm:$0xff] }
   0xd   :  { %v1283_v22 = vld [vmem:[%s2249_s0] ss:$0 sm:$0xff] }
   0xe   :  { %87 = vperm.xlu1 %1426, %v69_v7  }
   0xf   :  { %82 = vperm.xlu0 %1425, %v68_v8  }
  0x12   :  { %115 = vperm.xlu1 %1426, %v105_v9  }
  0x13   :  { %110 = vperm.xlu0 %1425, %v104_v10  }
  0x16   :  { %125 = vperm.xlu1 %1426, %v107_v11  }
  0x17   :  { %120 = vperm.xlu0 %1425, %v106_v12  }
  0x1a   :  { %563 = vperm.xlu1 %1426, %v553_v13  }
  0x1b   :  { %558 = vperm.xlu0 %1425, %v552_v14   ;;  %v1488_v14 = vmov 683565275  }
  0x1e   :  { %573 = vperm.xlu1 %1426, %v555_v15  }
  0x1f   :  { %568 = vperm.xlu0 %1425, %v554_v16   ;;  %v1489_v16 = vmov 2475754826  }
  0x81   :  { %v73_v17 = vpop.permute.xlu1 %72 }
  0x82   :  { %v39_v18 = vpop.permute.xlu0 %38  ;;  %v96_v25 = vmul.f32 %v1284_v21, %v73_v17 }
  0x83   :  { %v62_v26 = vmul.f32 %v1283_v22, %v39_v18 }
  0x85   :  { %v78_v19 = vpop.permute.xlu1 %77  ;;  %v100_v33 = vadd.f32 %v96_v25, %v62_v26 }
  0x86   :  { %v44_v20 = vpop.permute.xlu0 %43  ;;  %v97_v27 = vmul.f32 %v1284_v21, %v78_v19  ;;  %v1490_v19 = vmov 2131351028  }
  0x87   :  { %v63_v28 = vmul.f32 %v1283_v22, %v44_v20 }
  0x89   :  { %v54_v23 = vpop.permute.xlu1 %53  ;;  %v101_v32 = vadd.f32 %v97_v27, %v63_v28 }
  0x8a   :  { %v49_v24 = vpop.permute.xlu0 %48  ;;  %v65_v37 = vmul.f32 %v1283_v22, %v54_v23  ;;  %v1492_v23 = vmov 920167782  }
  0x8b   :  { %v64_v40 = vmul.f32 %v1283_v22, %v49_v24 }
  0x8d   :  { %v88_v29 = vpop.permute.xlu1 %87 }
  0x8e   :  { %v83_v30 = vpop.permute.xlu0 %82  ;;  %v99_v31 = vmul.f32 %v1284_v21, %v88_v29 }
  0x8f   :  { %v98_v34 = vmul.f32 %v1284_v21, %v83_v30  ;;  %v1491_v21 = vmov 2102212464   ;;  %v1493_v30 = vmov 1326507024  }
  0x90   :  { %v103_v44 = vadd.f32 %v99_v31, %v65_v37 }
  0x91   :  { %v116_v35 = vpop.permute.xlu1 %115  ;;  %v102_v48 = vadd.f32 %v98_v34, %v64_v40 }
  0x92   :  { %v111_v36 = vpop.permute.xlu0 %110  ;;  %v1597_v38 = vadd.f32 %v116_v35, %v101_v32 }
  0x93   :  { %v1599_v39 = vadd.f32 %v111_v36, %v100_v33 }
  0x94   :  { %v236_v41 = vand.u32 2147483647, %v1597_v38  ;;  %v239_v42 = vand.u32 2139095040, %v1597_v38 }
  0x95   :  { %v132_v43 = vand.u32 2147483647, %v1599_v39  ;;  %v135_v45 = vand.u32 2139095040, %v1599_v39  ;;  %v126_v46 = vpop.permute.xlu1 %125 }
  0x96   :  { %v121_v47 = vpop.permute.xlu0 %120  ;;  %v240_v49 = vshrl.u32 %v239_v42, 23  ;;  %v243_v50 = vand.u32 8388607, %v236_v41  ;;  %v1609_v52 = vadd.f32 %v126_v46, %v103_v44 }
  0x97   :  { %v139_v51 = vand.u32 8388607, %v132_v43  ;;  %v136_v53 = vshrl.u32 %v135_v45, 23  ;;  %v1612_v56 = vadd.f32 %v121_v47, %v102_v48 }
  0x98   :  { %v1289_v54 = vadd.s32 4294967169, %v240_v49  ;;  %v444_v55 = vand.u32 2147483647, %v1609_v52  ;;  %v244_v57 = vor.u32 8388608, %v243_v50  ;;  %v447_v59 = vand.u32 2139095040, %v1609_v52 }
  0x99   :  { %v1285_v58 = vadd.s32 4294967169, %v136_v53  ;;  %v140_v61 = vor.u32 8388608, %v139_v51  ;;  %v340_v1 = vand.u32 2147483647, %v1612_v56  ;;  %v343_v12 = vand.u32 2139095040, %v1612_v56 }
  0x9a   :  { %v246_v60 = vadd.s32 1, %v1289_v54  ;;  %v448_v63 = vshrl.u32 %v447_v59, 23  ;;  %v1617_v0 = vand.u32 8388607, %v444_v55  ;;  %v1620_v3 = vshll.u32 %v244_v57, 8 }
  0x9b   :  { %v142_v62 = vadd.s32 1, %v1285_v58  ;;  %v1622_v8 = vshll.u32 %v140_v61, 8 }
  0x9c   :  { %vm247_vm0 = vcmp.gt.s32.totalorder %v246_v60, 0  ;;  %v1297_v4 = vadd.s32 4294967169, %v448_v63  ;;  %v452_v11 = vor.u32 8388608, %v1617_v0 }
  0x9d   :  { %v248_v2 = vsel %vm247_vm0, %v246_v60, 0  ;;  %vm143_vm1 = vcmp.gt.s32.totalorder %v142_v62, 0 }
  0x9e   :  { %v249_v5 = vshrl.u32 %v248_v2, 5  ;;  %v250_v6 = vand.u32 31, %v248_v2  ;;  %v144_v7 = vsel %vm143_vm1, %v142_v62, 0  ;;  %v1630_v18 = vadd.s32 1, %v1297_v4 }
  0x9f   :  { %v1624_v9 = vshrl.u32 %v144_v7, 5  ;;  %v146_v10 = vand.u32 31, %v144_v7 }
  0xa0   :  { %v251_v13 = vsub.s32 32, %v250_v6  ;;  %v253_v15 = vshll.u32 %v1488_v14, %v250_v6  ;;  %v256_v17 = vshll.u32 %v1489_v16, %v250_v6  ;;  %v259_v20 = vshll.u32 %v1490_v19, %v250_v6 }
  0xa1   :  { %v262_v22 = vshll.u32 %v1491_v21, %v250_v6  ;;  %v265_v24 = vshll.u32 %v1492_v23, %v250_v6  ;;  %vm268_vm2 = vcmp.lt.s32.totalorder %v249_v5, 1  ;;  %vm269_vm3 = vcmp.lt.s32.totalorder %v249_v5, 2 }
  0xa2   :  { %v254_v25 = vshrl.u32 %v1489_v16, %v251_v13  ;;  %v257_v26 = vshrl.u32 %v1490_v19, %v251_v13  ;;  %v260_v27 = vshrl.u32 %v1491_v21, %v251_v13  ;;  %v252_v28 = vshrl.u32 %v1488_v14, %v251_v13 }
  0xa3   :  { %v263_v29 = vshrl.u32 %v1492_v23, %v251_v13  ;;  %v266_v31 = vshrl.u32 %v1493_v30, %v251_v13  ;;  %vm270_vm4 = vcmp.lt.s32.totalorder %v249_v5, 3  ;;  %v147_v35 = vsub.s32 32, %v146_v10 }
  0xa4   :  { %v255_v32 = vor.u32 %v254_v25, %v253_v15  ;;  %v258_v33 = vor.u32 %v257_v26, %v256_v17  ;;  %v261_v34 = vor.u32 %v260_v27, %v259_v20  ;;  %vm271_vm5 = vcmp.lt.s32.totalorder %v249_v5, 4 }
  0xa5   :  { %v264_v36 = vor.u32 %v263_v29, %v262_v22  ;;  %v267_v37 = vor.u32 %v266_v31, %v265_v24  ;;  %v149_v40 = vshll.u32 %v1488_v14, %v146_v10  ;;  %v152_v50 = vshll.u32 %v1489_v16, %v146_v10 }
  0xa6   :  { %v272_v42 = vsel %vm268_vm2, %v252_v28, %v255_v32  ;;  %v273_v44 = vsel %vm271_vm5, %v261_v34, 2102212464  ;;  %v276_v45 = vsel %vm268_vm2, %v255_v32, %v258_v33  ;;  %v280_v46 = vsel %vm268_vm2, %v258_v33, %v261_v34 }
  0xa7   :  { %v274_v47 = vsel %vm270_vm4, %v258_v33, %v273_v44  ;;  %v277_v48 = vsel %vm271_vm5, %v264_v36, 920167782  ;;  %v281_v49 = vsel %vm271_vm5, %v267_v37, 1326507024  ;;  %v148_v54 = vshrl.u32 %v1488_v14, %v147_v35 }
  0xa8   :  { %v278_v51 = vsel %vm270_vm4, %v261_v34, %v277_v48  ;;  %v282_v53 = vsel %vm270_vm4, %v264_v36, %v281_v49  ;;  %v150_v57 = vshrl.u32 %v1489_v16, %v147_v35  ;;  %v275_v58 = vsel %vm269_vm3, %v272_v42, %v274_v47 }
  0xa9   :  { %v279_v59 = vsel %vm269_vm3, %v276_v45, %v278_v51  ;;  %v283_v60 = vsel %vm269_vm3, %v280_v46, %v282_v53  ;;  %v153_v61 = vshrl.u32 %v1490_v19, %v147_v35  ;;  %v155_v13 = vshll.u32 %v1490_v19, %v146_v10 }
  0xaa   :  { %v1656_v62 = vmul.u32.u64.low %v1620_v3, %v283_v60  ;;  %v1657_v63 = vmul.u32.u64.high %v1620_v3, %v283_v60, %v1656_v62  ;;  %v1660_v2 = vmul.u32.u64.low %v1620_v3, %v279_v59  ;;  %v1661_v4 = vmul.u32.u64.high %v1620_v3, %v279_v59, %v1660_v2 }
  0xab   :  { %v151_v6 = vor.u32 %v150_v57, %v149_v40  ;;  %v154_v7 = vor.u32 %v153_v61, %v152_v50  ;;  %v156_v15 = vshrl.u32 %v1491_v21, %v147_v35  ;;  %v291_v5 = vmul.u32 %v1620_v3, %v275_v58 }
  0xac   :  { %v158_v17 = vshll.u32 %v1491_v21, %v146_v10  ;;  %v159_v20 = vshrl.u32 %v1492_v23, %v147_v35  ;;  %v162_v22 = vshrl.u32 %v1493_v30, %v147_v35  ;;  %v161_v25 = vshll.u32 %v1492_v23, %v146_v10 }
  0xad   :  { %v157_v24 = vor.u32 %v156_v15, %v155_v13  ;;  %vm164_vm6 = vcmp.lt.s32.totalorder %v1624_v9, 1  ;;  %vm165_vm7 = vcmp.lt.s32.totalorder %v1624_v9, 2  ;;  %vm293_vm8 = vc.u32 %v1657_v63, %v1660_v2 }
  0xae   :  { %v294_v26 = vadd.s32 1, %v1661_v4  ;;  %v160_v27 = vor.u32 %v159_v20, %v158_v17  ;;  %vm166_vm9 = vcmp.lt.s32.totalorder %v1624_v9, 3  ;;  %v163_v3 = vor.u32 %v162_v22, %v161_v25 }
  0xaf   :  { %vm167_vm10 = vcmp.lt.s32.totalorder %v1624_v9, 4  ;;  %v168_v28 = vsel %vm164_vm6, %v148_v54, %v151_v6  ;;  %v172_v29 = vsel %vm164_vm6, %v151_v6, %v154_v7  ;;  %v176_v33 = vsel %vm164_vm6, %v154_v7, %v157_v24  ;;  %v548_v54 = vld [vmem:[%s2254_s5] sm:$0xff] }
  0xb0   :  { %v295_v31 = vsel %vm293_vm8, %v294_v26, %v1661_v4  ;;  %v169_v10 = vsel %vm167_vm10, %v157_v24, 2102212464  ;;  %v173_v32 = vsel %vm167_vm10, %v160_v27, 920167782  ;;  %v177_v37 = vsel %vm167_vm10, %v163_v3, 1326507024  ;;  %1347 = vmatprep.mubr.msk.f32.mxu0 %vm576_vm12, %v548_v54 }
  0xb1   :  { %v296_v34 = vadd.s32 %v295_v31, %v291_v5  ;;  %v170_v35 = vsel %vm166_vm9, %v154_v7, %v169_v10  ;;  %v174_v36 = vsel %vm166_vm9, %v157_v24, %v173_v32  ;;  %v178_v44 = vsel %vm166_vm9, %v160_v27, %v177_v37 }
  0xb2   :  { %v171_v40 = vsel %vm165_vm7, %v168_v28, %v170_v35  ;;  %v175_v42 = vsel %vm165_vm7, %v172_v29, %v174_v36  ;;  %vm455_vm11 = vcmp.gt.s32.totalorder %v1630_v18, 0  ;;  %v179_v46 = vsel %vm165_vm7, %v176_v33, %v178_v44 }
  0xb3   :  { %v297_v45 = vadd.s32 536870912, %v296_v34  ;;  %v1687_v47 = vmul.u32.u64.low %v1622_v8, %v175_v42  ;;  %v1688_v48 = vmul.u32.u64.high %v1622_v8, %v175_v42, %v1687_v47  ;;  %v456_v51 = vsel %vm455_vm11, %v1630_v18, 0 }
  0xb4   :  { %v1692_v49 = vmul.u32.u64.low %v1622_v8, %v179_v46  ;;  %v1693_v50 = vmul.u32.u64.high %v1622_v8, %v179_v46, %v1692_v49  ;;  %v344_v53 = vshrl.u32 %v343_v12, 23  ;;  %v458_v57 = vand.u32 31, %v456_v51 }
  0xb5   :  { %v1701_v9 = vshrl.u32 %v297_v45, 30  ;;  %v187_v58 = vmul.u32 %v1622_v8, %v171_v40  ;;  %v1706_v59 = vshll.u32 %v452_v11, 8  ;;  %v1710_v60 = vand.u32 8388607, %v340_v1 }
  0xb6   :  { %v190_v18 = vadd.s32 1, %v1688_v48  ;;  %v457_v61 = vshrl.u32 %v456_v51, 5  ;;  %v459_v62 = vsub.s32 32, %v458_v57  ;;  %vm189_vm13 = vc.u32 %v1693_v50, %v1687_v47 }
  0xb7   :  { %v299_v12 = vshll.u32 %v1701_v9, 30  ;;  %v461_v0 = vshll.u32 %v1488_v14, %v458_v57  ;;  %v464_v8 = vshll.u32 %v1489_v16, %v458_v57  ;;  %v1293_v11 = vadd.s32 4294967169, %v344_v53 }
  0xb8   :  { %v191_v6 = vsel %vm189_vm13, %v190_v18, %v1688_v48  ;;  %v462_v7 = vshrl.u32 %v1489_v16, %v459_v62  ;;  %v467_v13 = vshll.u32 %v1490_v19, %v458_v57  ;;  %v465_v5 = vshrl.u32 %v1490_v19, %v459_v62 }
  0xb9   :  { %v1719_v4 = vsub.s32 %v296_v34, %v299_v12  ;;  %v192_v15 = vadd.s32 %v191_v6, %v187_v58  ;;  %v468_v17 = vshrl.u32 %v1491_v21, %v459_v62  ;;  %v470_v20 = vshll.u32 %v1491_v21, %v458_v57 }
  0xba   :  { %v463_v24 = vor.u32 %v462_v7, %v461_v0  ;;  %v471_v25 = vshrl.u32 %v1492_v23, %v459_v62  ;;  %v473_v26 = vshll.u32 %v1492_v23, %v458_v57  ;;  %v466_v3 = vor.u32 %v465_v5, %v464_v8 }
  0xbb   :  { %v302_v22 = vsub.s32 0, %v1719_v4  ;;  %v193_v27 = vadd.s32 536870912, %v192_v15  ;;  %v469_v28 = vor.u32 %v468_v17, %v467_v13  ;;  %v474_v29 = vshrl.u32 %v1493_v30, %v459_v62 }
  0xbc   :  { %v460_v10 = vshrl.u32 %v1488_v14, %v459_v62  ;;  %v472_v32 = vor.u32 %v471_v25, %v470_v20  ;;  %vm476_vm14 = vcmp.lt.s32.totalorder %v457_v61, 1  ;;  %vm478_vm15 = vcmp.lt.s32.totalorder %v457_v61, 3 }
  0xbd   :  { %v1290_v31 = vmin.u32 %v302_v22, %v1719_v4  ;;  %v194_v33 = vshrl.u32 %v193_v27, 30  ;;  %v475_v34 = vor.u32 %v474_v29, %v473_v26  ;;  %vm479_vm0 = vcmp.lt.s32.totalorder %v457_v61, 4 }
  0xbe   :  { %v480_v36 = vsel %vm476_vm14, %v460_v10, %v463_v24  ;;  %v481_v37 = vsel %vm479_vm0, %v469_v28, 2102212464  ;;  %v484_v40 = vsel %vm476_vm14, %v463_v24, %v466_v3  ;;  %v485_v45 = vsel %vm479_vm0, %v472_v32, 920167782 }
  0xbf   :  { %v304_v35 = vclz %v1290_v31  ;;  %v195_v42 = vshll.u32 %v194_v33, 30  ;;  %v482_v44 = vsel %vm478_vm15, %v466_v3, %v481_v37  ;;  %v488_v46 = vsel %vm476_vm14, %v466_v3, %v469_v28 }
  0xc0   :  { %vm477_vm1 = vcmp.lt.s32.totalorder %v457_v61, 2  ;;  %v486_v49 = vsel %vm478_vm15, %v469_v28, %v485_v45  ;;  %v489_v51 = vsel %vm479_vm0, %v475_v34, 1326507024  ;;  %v292_v13 = vadd.s32 %v1660_v2, %v1657_v63 }
  0xc1   :  { %v1291_v48 = vadd.s32 4294967294, %v304_v35  ;;  %v1735_v53 = vsub.s32 %v192_v15, %v195_v42  ;;  %v483_v54 = vsel %vm477_vm1, %v480_v36, %v482_v44  ;;  %v487_v57 = vsel %vm477_vm1, %v484_v40, %v486_v49 }
  0xc2   :  { %v490_v58 = vsel %vm478_vm15, %v472_v32, %v489_v51  ;;  %v1739_v18 = vmul.u32.u64.low %v1706_v59, %v487_v57  ;;  %v1740_v62 = vmul.u32.u64.high %v1706_v59, %v487_v57, %v1739_v18  ;;  %v350_v5 = vadd.s32 1, %v1293_v11 }
  0xc3   :  { %vm1292_vm2 = vcmp.lt.s32.totalorder %v1291_v48, 0  ;;  %v491_v12 = vsel %vm477_vm1, %v488_v46, %v490_v58  ;;  %v198_v8 = vsub.s32 0, %v1735_v53  ;;  %v499_v22 = vmul.u32 %v1706_v59, %v483_v54 }
  0xc4   :  { %v307_v0 = vsel %vm1292_vm2, 0, %v1291_v48  ;;  %v1745_v6 = vmul.u32.u64.low %v1706_v59, %v491_v12  ;;  %v1746_v7 = vmul.u32.u64.high %v1706_v59, %v491_v12, %v1745_v6  ;;  %v348_v24 = vor.u32 8388608, %v1710_v60 }
  0xc5   :  { %v308_v15 = vsub.s32 32, %v307_v0  ;;  %v312_v61 = vsub.s32 4294967266, %v307_v0  ;;  %v309_v17 = vshll.u32 %v1719_v4, %v307_v0  ;;  %v1286_v20 = vmin.u32 %v198_v8, %v1735_v53 }
  0xc6   :  { %v502_v27 = vadd.s32 1, %v1740_v62  ;;  %vm351_vm3 = vcmp.gt.s32.totalorder %v350_v5, 0  ;;  %vm501_vm4 = vc.u32 %v1746_v7, %v1739_v18  ;;  %v218_v2 = vsub.s32 4, %v194_v33 }
  0xc7   :  { %v310_v25 = vshrl.u32 %v292_v13, %v308_v15  ;;  %v313_v26 = vadd.s32 127, %v312_v61  ;;  %v200_v3 = vclz %v1286_v20  ;;  %v352_v63 = vsel %vm351_vm3, %v350_v5, 0 }
  0xc8   :  { %vm134_vm5 = vcmp.lt.s32.totalorder %v1599_v39, 0  ;;  %v503_v4 = vsel %vm501_vm4, %v502_v27, %v1740_v62  ;;  %v188_v59 = vadd.s32 %v1687_v47, %v1693_v50  ;;  %v354_v31 = vand.u32 31, %v352_v63 }
  0xc9   :  { %v311_v11 = vor.u32 %v310_v25, %v309_v17  ;;  %v314_v28 = vshll.u32 %v313_v26, 23  ;;  %v1287_v60 = vadd.s32 4294967294, %v200_v3  ;;  %v504_v29 = vadd.s32 %v503_v4, %v499_v22 }
  0xca   :  { %v1761_v32 = vshrl.u32 %v352_v63, 5  ;;  %v1763_v34 = vshll.u32 %v348_v24, 8  ;;  %v322_v35 = vsub.s32 4, %v1701_v9  ;;  %v355_v37 = vsub.s32 32, %v354_v31 }
  0xcb   :  { %v315_v10 = vor.u32 4788187, %v314_v28  ;;  %vm1288_vm6 = vcmp.lt.s32.totalorder %v1287_v60, 0  ;;  %v505_v36 = vadd.s32 536870912, %v504_v29  ;;  %v1768_v40 = vsel %vm134_vm5, %v218_v2, %v194_v33 }
  0xcc   :  { %v318_v44 = vcvt.s32.f32 %v311_v11  ;;  %v203_v47 = vsel %vm1288_vm6, 0, %v1287_v60  ;;  %v357_v50 = vshll.u32 %v1488_v14, %v354_v31  ;;  %v360_v49 = vshll.u32 %v1489_v16, %v354_v31 }
  0xcd   :  { %v316_v42 = vand.u32 2147483647, %v315_v10  ;;  %v204_v45 = vsub.s32 32, %v203_v47  ;;  %v208_v46 = vsub.s32 4294967266, %v203_v47  ;;  %v1771_v48 = vshrl.u32 %v505_v36, 30 }
  0xce   :  { %v205_v54 = vshll.u32 %v1735_v53, %v203_v47  ;;  %v358_v57 = vshrl.u32 %v1489_v16, %v355_v37  ;;  %v361_v58 = vshrl.u32 %v1490_v19, %v355_v37  ;;  %vm238_vm7 = vcmp.lt.s32.totalorder %v1597_v38, 0 }
  0xcf   :  { %v319_v51 = vmul.f32 %v318_v44, %v316_v42  ;;  %v206_v33 = vshrl.u32 %v188_v59, %v204_v45  ;;  %v209_v12 = vadd.s32 127, %v208_v46  ;;  %v507_v62 = vshll.u32 %v1771_v48, 30 }
  0xd0   :  { %v364_v0 = vshrl.u32 %v1491_v21, %v355_v37  ;;  %v359_v8 = vor.u32 %v358_v57, %v357_v50  ;;  %v362_v6 = vor.u32 %v361_v58, %v360_v49  ;;  %v363_v13 = vshll.u32 %v1490_v19, %v354_v31 }
  0xd1   :  { %vm372_vm8 = vcmp.lt.s32.totalorder %v1761_v32, 1  ;;  %v207_v15 = vor.u32 %v206_v33, %v205_v54  ;;  %v210_v53 = vshll.u32 %v209_v12, 23  ;;  %v1782_v61 = vsub.s32 %v504_v29, %v507_v62 }
  0xd2   :  { %v366_v5 = vshll.u32 %v1491_v21, %v354_v31  ;;  %v365_v17 = vor.u32 %v364_v0, %v363_v13  ;;  %v367_v20 = vshrl.u32 %v1492_v23, %v355_v37  ;;  %v369_v22 = vshll.u32 %v1492_v23, %v354_v31 }
  0xd3   :  { %v370_v24 = vshrl.u32 %v1493_v30, %v355_v37  ;;  %v320_v25 = vxor.u32 2147483648, %v319_v51  ;;  %v211_v26 = vor.u32 4788187, %v210_v53  ;;  %v510_v27 = vsub.s32 0, %v1782_v61 }
  0xd4   :  { %v356_v3 = vshrl.u32 %v1488_v14, %v355_v37  ;;  %v214_v63 = vcvt.s32.f32 %v207_v15  ;;  %v368_v2 = vor.u32 %v367_v20, %v366_v5  ;;  %vm374_vm9 = vcmp.lt.s32.totalorder %v1761_v32, 3 }
  0xd5   :  { %v371_v11 = vor.u32 %v370_v24, %v369_v22  ;;  %v212_v28 = vand.u32 2147483647, %v211_v26  ;;  %v1298_v4 = vmin.u32 %v510_v27, %v1782_v61  ;;  %vm375_vm10 = vcmp.lt.s32.totalorder %v1761_v32, 4 }
  0xd6   :  { %v380_v59 = vsel %vm372_vm8, %v359_v8, %v362_v6  ;;  %v377_v60 = vsel %vm375_vm10, %v365_v17, 2102212464  ;;  %v381_v29 = vsel %vm375_vm10, %v368_v2, 920167782  ;;  %v384_v31 = vsel %vm372_vm8, %v362_v6, %v365_v17 }
  0xd7   :  { %v385_v10 = vsel %vm375_vm10, %v371_v11, 1326507024  ;;  %v215_v36 = vmul.f32 %v214_v63, %v212_v28  ;;  %v512_v37 = vclz %v1298_v4  ;;  %vm373_vm11 = vcmp.lt.s32.totalorder %v1761_v32, 2 }
  0xd8   :  { %v382_v42 = vsel %vm374_vm9, %v365_v17, %v381_v29  ;;  %v321_v44 = vsel %vm238_vm7, %v320_v25, %v319_v51  ;;  %v376_v47 = vsel %vm372_vm8, %v356_v3, %v359_v8  ;;  %v386_v45 = vsel %vm374_vm9, %v368_v2, %v385_v10 }
  0xd9   :  { %v383_v50 = vsel %vm373_vm11, %v380_v59, %v382_v42  ;;  %v216_v46 = vxor.u32 2147483648, %v215_v36  ;;  %v1299_v49 = vadd.s32 4294967294, %v512_v37  ;;  %v378_v54 = vsel %vm374_vm9, %v362_v6, %v377_v60 }
  0xda   :  { %v387_v57 = vsel %vm373_vm11, %v384_v31, %v386_v45  ;;  %v1817_v33 = vmul.u32.u64.low %v1763_v34, %v383_v50  ;;  %v1818_v12 = vmul.u32.u64.high %v1763_v34, %v383_v50, %v1817_v33  ;;  %vm1825_vm14 = vcmp.le.f32.partialorder %v132_v43, 0.7853982 }
  0xdb   :  { %v1813_v58 = vmul.u32.u64.low %v1763_v34, %v387_v57  ;;  %v1814_v51 = vmul.u32.u64.high %v1763_v34, %v387_v57, %v1813_v58  ;;  %v217_v62 = vsel %vm134_vm5, %v216_v46, %v215_v36  ;;  %vm1300_vm13 = vcmp.lt.s32.totalorder %v1299_v49, 0 }
  0xdc   :  { %v515_v8 = vsel %vm1300_vm13, 0, %v1299_v49  ;;  %v379_v6 = vsel %vm373_vm11, %v376_v47, %v378_v54  ;;  %v220_v13 = vsel %vm1825_vm14, %v1599_v39, %v217_v62  ;;  %vm1836_vm15 = vcmp.le.f32.partialorder %v236_v41, 0.7853982 }
  0xdd   :  { %v520_v53 = vsub.s32 4294967266, %v515_v8  ;;  %v221_v43 = vsel %vm1825_vm14, 0, %v1768_v40  ;;  %1427 = vcosq.f32 %v220_v13  ;;  %v324_v32 = vsel %vm1836_vm15, %v1597_v38, %v321_v44 }
  0xde   :  { %vm397_vm0 = vc.u32 %v1814_v51, %v1817_v33  ;;  %v398_v5 = vadd.s32 1, %v1818_v12  ;;  %1429 = vsinq.f32 %v220_v13  ;;  %v323_v41 = vsel %vm238_vm7, %v322_v35, %v1701_v9 }
  0xdf   :  { %v516_v17 = vsub.s32 32, %v515_v8  ;;  %v521_v20 = vadd.s32 127, %v520_v53  ;;  %v395_v40 = vmul.u32 %v1763_v34, %v379_v6  ;;  %v500_v22 = vadd.s32 %v1739_v18, %v1746_v7 }
  0xe0   :  { %v399_v24 = vsel %vm397_vm0, %v398_v5, %v1818_v12  ;;  %v225_v25 = vadd.s32 3, %v221_v43  ;;  %1431 = vcosq.f32 %v324_v32  ;;  %v325_v3 = vsel %vm1836_vm15, 0, %v323_v41 }
  0xe1   :  { %v522_v26 = vshll.u32 %v521_v20, 23  ;;  %v400_v27 = vadd.s32 %v399_v24, %v395_v40  ;;  %1433 = vsinq.f32 %v324_v32  ;;  %v518_v63 = vshrl.u32 %v500_v22, %v516_v17 }
  0xe2   :  { %v329_v9 = vadd.s32 3, %v325_v3  ;;  %v517_v35 = vshll.u32 %v1782_v61, %v515_v8  ;;  %v226_v28 = vand.u32 3, %v225_v25  ;;  %vm224_vm4 = vweird.f32 %v1599_v39 }
  0xe3   :  { %v401_v2 = vadd.s32 536870912, %v400_v27  ;;  %v523_v11 = vor.u32 4788187, %v522_v26  ;;  %vm328_vm8 = vweird.f32 %v1597_v38  ;;  %vm446_vm10 = vcmp.lt.s32.totalorder %v1609_v52, 0 }
  0xe4   :  { %v519_v7 = vor.u32 %v518_v63, %v517_v35  ;;  %v330_v29 = vand.u32 3, %v329_v9  ;;  %vm231_vm1 = vcmp.eq.s32.totalorder %v226_v28, 2  ;;  %vm227_vm2 = vcmp.lt.s32.totalorder %v226_v28, 2 }
  0xe5   :  { %v1861_v34 = vshrl.u32 %v401_v2, 30  ;;  %v524_v31 = vand.u32 2147483647, %v523_v11  ;;  %vm228_vm3 = vcmp.eq.s32.totalorder %v226_v28, 0  ;;  %v396_v32 = vadd.s32 %v1817_v33, %v1814_v51 }
  0xe6   :  { %v526_v44 = vcvt.s32.f32 %v519_v7  ;;  %vm335_vm5 = vcmp.eq.s32.totalorder %v330_v29, 2  ;;  %vm332_vm6 = vcmp.eq.s32.totalorder %v330_v29, 0  ;;  %vm331_vm7 = vcmp.lt.s32.totalorder %v330_v29, 2 }
  0xe7   :  { %v1428_v18 = vpop.eup %1427  ;;  %v403_v4 = vshll.u32 %v1861_v34, 30  ;;  %vm1873_vm11 = vcmp.le.f32.partialorder %v444_v55, 0.7853982  ;;  %v530_v26 = vsub.s32 4, %v1771_v48  ;;  %v426_v63 = vsub.s32 4, %v1861_v34 }
  0xe8   :  { %v1430_v59 = vpop.eup %1429  ;;  %v232_v60 = vxor.u32 2147483648, %v1428_v18  ;;  %v527_v54 = vmul.f32 %v526_v44, %v524_v31  ;;  %vm342_vm13 = vcmp.lt.s32.totalorder %v1612_v56, 0  ;;  %vm341_vm14 = vcmp.le.f32.partialorder %v340_v1, 0.7853982 }
  0xe9   :  { %v404_v10 = vsub.s32 %v400_v27, %v403_v4  ;;  %v229_v36 = vxor.u32 2147483648, %v1430_v59  ;;  %v531_v55 = vsel %vm446_vm10, %v530_v26, %v1771_v48  ;;  %v427_v11 = vsel %vm342_vm13, %v426_v63, %v1861_v34 }
  0xea   :  { %v1432_v37 = vpop.eup %1431  ;;  %v233_v42 = vsel %vm231_vm1, %v232_v60, %v1430_v59  ;;  %v528_v13 = vxor.u32 2147483648, %v527_v54  ;;  %v533_v9 = vsel %vm1873_vm11, 0, %v531_v55  ;;  %v429_v4 = vsel %vm341_vm14, 0, %v427_v11 }
  0xeb   :  { %v1434_v61 = vpop.eup %1433  ;;  %v406_v47 = vsub.s32 0, %v404_v10  ;;  %v230_v50 = vsel %vm228_vm3, %v1428_v18, %v229_v36  ;;  %v336_v45 = vxor.u32 2147483648, %v1432_v37  ;;  %v537_v18 = vadd.s32 3, %v533_v9 }
  0xec   :  { %v234_v46 = vsel %vm227_vm2, %v230_v50, %v233_v42  ;;  %v333_v49 = vxor.u32 2147483648, %v1434_v61  ;;  %v529_v43 = vsel %vm446_vm10, %v528_v13, %v527_v54  ;;  %v433_v60 = vadd.s32 3, %v429_v4 }
  0xed   :  { %v1294_v57 = vmin.u32 %v406_v47, %v404_v10  ;;  %v337_v58 = vsel %vm335_vm5, %v336_v45, %v1434_v61  ;;  %v235_v12 = vsel %vm224_vm4, nan, %v234_v46  ;;  %v532_v22 = vsel %vm1873_vm11, %v1609_v52, %v529_v43 }
  0xee   :  { %v334_v62 = vsel %vm332_vm6, %v1432_v37, %v333_v49  ;;  %1435 = vcosq.f32 %v532_v22  ;;  %v538_v59 = vand.u32 3, %v537_v18  ;;  %vm536_vm4 = vweird.f32 %v1609_v52  ;;  %v551_v52 = vld [vmem:[%s2254_s5 + $0x18] sm:$0xff] }
  0xef   :  { %v408_v0 = vclz %v1294_v57  ;;  %v338_v8 = vsel %vm331_vm7, %v334_v62, %v337_v58  ;;  %1437 = vsinq.f32 %v532_v22  ;;  %vm432_vm6 = vweird.f32 %v1612_v56  ;;  %v549_v57 = vld [vmem:[%s2254_s5 + $0x8] sm:$0xff]  ;;  %v550_v58 = vld [vmem:[%s2254_s5 + $0x10] sm:$0xff]  ;;  %v559_v62 = vpop.permute.xlu0 %558 }
  0xf0   :  { %v339_v6 = vsel %vm328_vm8, nan, %v338_v8  ;;  %vm540_vm15 = vcmp.eq.s32.totalorder %v538_v59, 0  ;;  %vm543_vm0 = vcmp.eq.s32.totalorder %v538_v59, 2  ;;  %vm539_vm1 = vcmp.lt.s32.totalorder %v538_v59, 2 }
  0xf1   :  { %v1295_v15 = vadd.s32 4294967294, %v408_v0  ;;  %v1364_v53 = vpack.c.bf16 %v339_v6, %v235_v12  ;;  %v564_v12 = vpop.permute.xlu1 %563 }
  0xf3   :  { %vm1296_vm9 = vcmp.lt.s32.totalorder %v1295_v15, 0  ;;  %1365 = vmatprep.subr.bf16.mxu0 %v1364_v53 }
  0xf4   :  { %v411_v39 = vsel %vm1296_vm9, 0, %v1295_v15  ;;  %1367 = vmatpush3.bf16.msra.mxu0 %v1364_v53 }
  0xf5   :  { %v412_v5 = vsub.s32 32, %v411_v39  ;;  %v416_v41 = vsub.s32 4294967266, %v411_v39  ;;  %v413_v17 = vshll.u32 %v404_v10, %v411_v39  ;;  %v434_v10 = vand.u32 3, %v433_v60  ;;  %v574_v39 = vpop.permute.xlu1 %573 }
  0xf7   :  { %v414_v20 = vshrl.u32 %v396_v32, %v412_v5  ;;  %v417_v40 = vadd.s32 127, %v416_v41  ;;  %vm439_vm2 = vcmp.eq.s32.totalorder %v434_v10, 2  ;;  %vm436_vm3 = vcmp.eq.s32.totalorder %v434_v10, 0 }
  0xf8   :  { %v1436_v7 = vpop.eup %1435  ;;  %vm435_vm5 = vcmp.lt.s32.totalorder %v434_v10, 2 }
  0xf9   :  { %v415_v24 = vor.u32 %v414_v20, %v413_v17  ;;  %v418_v25 = vshll.u32 %v417_v40, 23  ;;  %v1438_v48 = vpop.eup %1437  ;;  %v544_v31 = vxor.u32 2147483648, %v1436_v7  ;;  %v569_v40 = vpop.permute.xlu0 %568 }
  0xfa   :  { %v541_v29 = vxor.u32 2147483648, %v1438_v48 }
  0xfb   :  { %v419_v51 = vor.u32 4788187, %v418_v25  ;;  %v422_v27 = vcvt.s32.f32 %v415_v24  ;;  %v545_v1 = vsel %vm543_vm0, %v544_v31, %v1438_v48 }
  0xfc   :  { %v542_v36 = vsel %vm540_vm15, %v1436_v7, %v541_v29 }
  0xfd   :  { %v420_v33 = vand.u32 2147483647, %v419_v51  ;;  %v546_v61 = vsel %vm539_vm1, %v542_v36, %v545_v1 }
  0xfe   :  { %v547_v45 = vsel %vm536_vm4, nan, %v546_v61 }
  0xff   :  { %v423_v3 = vmul.f32 %v422_v27, %v420_v33 }
 0x101   :  { %v424_v2 = vxor.u32 2147483648, %v423_v3 }
 0x103   :  { %v425_v35 = vsel %vm342_vm13, %v424_v2, %v423_v3 }
 0x104   :  { %v428_v28 = vsel %vm341_vm14, %v1612_v56, %v425_v35  ;;  %v1494_v56 = vmov 0.0|0.0  }
 0x105   :  { %1439 = vcosq.f32 %v428_v28  ;;  %1372 = vmatprep.subr.bf16.mxu1 %v1494_v56 }
 0x106   :  { %1441 = vsinq.f32 %v428_v28 }
 0x10f   :  { %v1440_v37 = vpop.eup %1439 }
 0x110   :  { %v1442_v34 = vpop.eup %1441  ;;  %v440_v42 = vxor.u32 2147483648, %v1440_v37 }
 0x111   :  { %v437_v44 = vxor.u32 2147483648, %v1442_v34 }
 0x112   :  { %v441_v47 = vsel %vm439_vm2, %v440_v42, %v1442_v34 }
 0x113   :  { %v438_v50 = vsel %vm436_vm3, %v1440_v37, %v437_v44 }
 0x114   :  { %v442_v46 = vsel %vm435_vm5, %v438_v50, %v441_v47 }
 0x115   :  { %v443_v49 = vsel %vm432_vm6, nan, %v442_v46 }
 0x116   :  { %v1368_v54 = vpack.c.bf16 %v547_v45, %v443_v49 }
 0x118   :  { %1369 = vmatprep.subr.bf16.mxu0 %v1368_v54 }
 0x119   :  { %1371 = vmatpush3.bf16.msra.mxu0 %v1368_v54 }
 0x11c   :  { %1348 = vmatmul.mubr.msk.f32.vlgmr.msra.gmra.mrb[0].mxu0 %vm576_vm12, %v549_v57 }
 0x11d   :  { %1350 = vmatprep.mubr.msk.f32.mxu0 %vm576_vm12, %v550_v58 }
 0x120   :  { %1351 = vmatmul.mubr.msk.f32.gmra.mrb[2].mxu0 %vm576_vm12, %v551_v52 }
 0x1ef   :  { %v1349_v0 = vpop.f32.mrb[0].mxu0 }
 0x1f0   :  { %v1907_v8 = vadd.f32 %v1349_v0, %v564_v12  ;;  %v655_v6 = vpop.f32.mrb[1].mxu0 }
 0x1f1   :  { %v1909_v13 = vadd.f32 %v655_v6, %v559_v62 }
 0x1f2   :  { %v778_v15 = vand.u32 2147483647, %v1907_v8  ;;  %v781_v53 = vand.u32 2139095040, %v1907_v8 }
 0x1f3   :  { %v674_v43 = vand.u32 2147483647, %v1909_v13  ;;  %v677_v32 = vand.u32 2139095040, %v1909_v13  ;;  %v1352_v5 = vpop.f32.mrb[2].mxu0 }
 0x1f4   :  { %v782_v41 = vshrl.u32 %v781_v53, 23  ;;  %v785_v38 = vand.u32 8388607, %v778_v15  ;;  %v1917_v17 = vadd.f32 %v1352_v5, %v574_v39  ;;  %v665_v20 = vpop.f32.mrb[3].mxu0 }
 0x1f5   :  { %v678_v22 = vshrl.u32 %v677_v32, 23  ;;  %v681_v24 = vand.u32 8388607, %v674_v43  ;;  %v1922_v51 = vadd.f32 %v665_v20, %v569_v40 }
 0x1f6   :  { %v1309_v25 = vadd.s32 4294967169, %v782_v41  ;;  %v986_v26 = vand.u32 2147483647, %v1917_v17  ;;  %v786_v33 = vor.u32 8388608, %v785_v38  ;;  %v989_v55 = vand.u32 2139095040, %v1917_v17 }
 0x1f7   :  { %v1305_v27 = vadd.s32 4294967169, %v678_v22  ;;  %v682_v63 = vor.u32 8388608, %v681_v24  ;;  %v882_v11 = vand.u32 2147483647, %v1922_v51  ;;  %v885_v36 = vand.u32 2139095040, %v1922_v51 }
 0x1f8   :  { %v788_v3 = vadd.s32 1, %v1309_v25  ;;  %v990_v9 = vshrl.u32 %v989_v55, 23  ;;  %v1927_v35 = vand.u32 8388607, %v986_v26  ;;  %v1930_v18 = vshll.u32 %v786_v33, 8 }
 0x1f9   :  { %v684_v2 = vadd.s32 1, %v1305_v27  ;;  %v1932_v60 = vshll.u32 %v682_v63, 8 }
 0x1fa   :  { %vm789_vm7 = vcmp.gt.s32.totalorder %v788_v3, 0  ;;  %v1317_v7 = vadd.s32 4294967169, %v990_v9  ;;  %v994_v10 = vor.u32 8388608, %v1927_v35 }
 0x1fb   :  { %v790_v28 = vsel %vm789_vm7, %v788_v3, 0  ;;  %vm685_vm8 = vcmp.gt.s32.totalorder %v684_v2, 0 }
 0x1fc   :  { %v791_v48 = vshrl.u32 %v790_v28, 5  ;;  %v792_v4 = vand.u32 31, %v790_v28  ;;  %v686_v59 = vsel %vm685_vm8, %v684_v2, 0  ;;  %v1940_v42 = vadd.s32 1, %v1317_v7 }
 0x1fd   :  { %v1934_v29 = vshrl.u32 %v686_v59, 5  ;;  %v688_v31 = vand.u32 31, %v686_v59 }
 0x1fe   :  { %v793_v1 = vsub.s32 32, %v792_v4  ;;  %v795_v37 = vshll.u32 %v1488_v14, %v792_v4  ;;  %v798_v34 = vshll.u32 %v1489_v16, %v792_v4  ;;  %v801_v61 = vshll.u32 %v1490_v19, %v792_v4 }
 0x1ff   :  { %v804_v44 = vshll.u32 %v1491_v21, %v792_v4  ;;  %v807_v47 = vshll.u32 %v1492_v23, %v792_v4  ;;  %vm810_vm9 = vcmp.lt.s32.totalorder %v791_v48, 1  ;;  %vm811_vm10 = vcmp.lt.s32.totalorder %v791_v48, 2 }
 0x200   :  { %v796_v50 = vshrl.u32 %v1489_v16, %v793_v1  ;;  %v799_v45 = vshrl.u32 %v1490_v19, %v793_v1  ;;  %v802_v46 = vshrl.u32 %v1491_v21, %v793_v1  ;;  %v794_v49 = vshrl.u32 %v1488_v14, %v793_v1 }
 0x201   :  { %v805_v54 = vshrl.u32 %v1492_v23, %v793_v1  ;;  %v808_v57 = vshrl.u32 %v1493_v30, %v793_v1  ;;  %vm812_vm11 = vcmp.lt.s32.totalorder %v791_v48, 3  ;;  %v689_v62 = vsub.s32 32, %v688_v31 }
 0x202   :  { %v797_v58 = vor.u32 %v796_v50, %v795_v37  ;;  %v800_v52 = vor.u32 %v799_v45, %v798_v34  ;;  %v803_v12 = vor.u32 %v802_v46, %v801_v61  ;;  %vm813_vm13 = vcmp.lt.s32.totalorder %v791_v48, 4 }
 0x203   :  { %v806_v0 = vor.u32 %v805_v54, %v804_v44  ;;  %v809_v6 = vor.u32 %v808_v57, %v807_v47  ;;  %v691_v53 = vshll.u32 %v1488_v14, %v688_v31  ;;  %v694_v22 = vshll.u32 %v1489_v16, %v688_v31 }
 0x204   :  { %v814_v39 = vsel %vm810_vm9, %v794_v49, %v797_v58  ;;  %v815_v32 = vsel %vm813_vm13, %v803_v12, 2102212464  ;;  %v818_v5 = vsel %vm810_vm9, %v797_v58, %v800_v52  ;;  %v822_v41 = vsel %vm810_vm9, %v800_v52, %v803_v12 }
 0x205   :  { %v816_v38 = vsel %vm812_vm11, %v800_v52, %v815_v32  ;;  %v819_v20 = vsel %vm813_vm13, %v806_v0, 920167782  ;;  %v823_v40 = vsel %vm813_vm13, %v809_v6, 1326507024  ;;  %v690_v33 = vshrl.u32 %v1488_v14, %v689_v62 }
 0x206   :  { %v820_v24 = vsel %vm812_vm11, %v803_v12, %v819_v20  ;;  %v824_v25 = vsel %vm812_vm11, %v806_v0, %v823_v40  ;;  %v692_v27 = vshrl.u32 %v1489_v16, %v689_v62  ;;  %v817_v55 = vsel %vm811_vm10, %v814_v39, %v816_v38 }
 0x207   :  { %v821_v3 = vsel %vm811_vm10, %v818_v5, %v820_v24  ;;  %v825_v63 = vsel %vm811_vm10, %v822_v41, %v824_v25  ;;  %v695_v2 = vshrl.u32 %v1490_v19, %v689_v62  ;;  %v697_v37 = vshll.u32 %v1490_v19, %v688_v31 }
 0x208   :  { %v1966_v9 = vmul.u32.u64.low %v1930_v18, %v825_v63  ;;  %v1967_v28 = vmul.u32.u64.high %v1930_v18, %v825_v63, %v1966_v9  ;;  %v1970_v7 = vmul.u32.u64.low %v1930_v18, %v821_v3  ;;  %v1971_v4 = vmul.u32.u64.high %v1930_v18, %v821_v3, %v1970_v7 }
 0x209   :  { %v693_v59 = vor.u32 %v692_v27, %v691_v53  ;;  %v696_v1 = vor.u32 %v695_v2, %v694_v22  ;;  %v698_v34 = vshrl.u32 %v1491_v21, %v689_v62  ;;  %v833_v48 = vmul.u32 %v1930_v18, %v817_v55 }
 0x20a   :  { %v700_v61 = vshll.u32 %v1491_v21, %v688_v31  ;;  %v701_v44 = vshrl.u32 %v1492_v23, %v689_v62  ;;  %v704_v47 = vshrl.u32 %v1493_v30, %v689_v62  ;;  %v703_v45 = vshll.u32 %v1492_v23, %v688_v31 }
 0x20b   :  { %v699_v50 = vor.u32 %v698_v34, %v697_v37  ;;  %vm706_vm14 = vcmp.lt.s32.totalorder %v1934_v29, 1  ;;  %vm707_vm15 = vcmp.lt.s32.totalorder %v1934_v29, 2  ;;  %vm835_vm0 = vc.u32 %v1967_v28, %v1970_v7 }
 0x20c   :  { %v836_v46 = vadd.s32 1, %v1971_v4  ;;  %v702_v49 = vor.u32 %v701_v44, %v700_v61  ;;  %vm708_vm1 = vcmp.lt.s32.totalorder %v1934_v29, 3  ;;  %v705_v18 = vor.u32 %v704_v47, %v703_v45 }
 0x20d   :  { %vm709_vm2 = vcmp.lt.s32.totalorder %v1934_v29, 4  ;;  %v710_v54 = vsel %vm706_vm14, %v690_v33, %v693_v59  ;;  %v714_v57 = vsel %vm706_vm14, %v693_v59, %v696_v1  ;;  %v718_v12 = vsel %vm706_vm14, %v696_v1, %v699_v50 }
 0x20e   :  { %v837_v58 = vsel %vm835_vm0, %v836_v46, %v1971_v4  ;;  %v711_v31 = vsel %vm709_vm2, %v699_v50, 2102212464  ;;  %v715_v52 = vsel %vm709_vm2, %v702_v49, 920167782  ;;  %v719_v53 = vsel %vm709_vm2, %v705_v18, 1326507024 }
 0x20f   :  { %v838_v62 = vadd.s32 %v837_v58, %v833_v48  ;;  %v712_v0 = vsel %vm708_vm1, %v696_v1, %v711_v31  ;;  %v716_v6 = vsel %vm708_vm1, %v699_v50, %v715_v52  ;;  %v720_v5 = vsel %vm708_vm1, %v702_v49, %v719_v53 }
 0x210   :  { %v713_v39 = vsel %vm707_vm15, %v710_v54, %v712_v0  ;;  %v717_v32 = vsel %vm707_vm15, %v714_v57, %v716_v6  ;;  %vm997_vm3 = vcmp.gt.s32.totalorder %v1940_v42, 0  ;;  %v721_v38 = vsel %vm707_vm15, %v718_v12, %v720_v5 }
 0x211   :  { %v839_v41 = vadd.s32 536870912, %v838_v62  ;;  %v1997_v20 = vmul.u32.u64.low %v1932_v60, %v717_v32  ;;  %v1998_v40 = vmul.u32.u64.high %v1932_v60, %v717_v32, %v1997_v20  ;;  %v998_v25 = vsel %vm997_vm3, %v1940_v42, 0 }
 0x212   :  { %v2002_v22 = vmul.u32.u64.low %v1932_v60, %v721_v38  ;;  %v2003_v24 = vmul.u32.u64.high %v1932_v60, %v721_v38, %v2002_v22  ;;  %v886_v33 = vshrl.u32 %v885_v36, 23  ;;  %v1000_v55 = vand.u32 31, %v998_v25 }
 0x213   :  { %v2008_v27 = vshrl.u32 %v839_v41, 30  ;;  %v729_v29 = vmul.u32 %v1932_v60, %v713_v39  ;;  %v2013_v3 = vshll.u32 %v994_v10, 8  ;;  %v2017_v63 = vand.u32 8388607, %v882_v11 }
 0x214   :  { %v732_v42 = vadd.s32 1, %v1998_v40  ;;  %v999_v9 = vshrl.u32 %v998_v25, 5  ;;  %v1001_v4 = vsub.s32 32, %v1000_v55  ;;  %vm731_vm4 = vc.u32 %v2003_v24, %v1997_v20 }
 0x215   :  { %v841_v2 = vshll.u32 %v2008_v27, 30  ;;  %v1003_v36 = vshll.u32 %v1488_v14, %v1000_v55  ;;  %v1006_v60 = vshll.u32 %v1489_v16, %v1000_v55  ;;  %v1313_v35 = vadd.s32 4294967169, %v886_v33 }
 0x216   :  { %v733_v59 = vsel %vm731_vm4, %v732_v42, %v1998_v40  ;;  %v1004_v1 = vshrl.u32 %v1489_v16, %v1001_v4  ;;  %v1009_v37 = vshll.u32 %v1490_v19, %v1000_v55  ;;  %v1007_v48 = vshrl.u32 %v1490_v19, %v1001_v4 }
 0x217   :  { %v2025_v10 = vsub.s32 %v838_v62, %v841_v2  ;;  %v734_v34 = vadd.s32 %v733_v59, %v729_v29  ;;  %v1010_v61 = vshrl.u32 %v1491_v21, %v1001_v4  ;;  %v1012_v44 = vshll.u32 %v1491_v21, %v1000_v55 }
 0x218   :  { %v1005_v50 = vor.u32 %v1004_v1, %v1003_v36  ;;  %v1013_v45 = vshrl.u32 %v1492_v23, %v1001_v4  ;;  %v1015_v46 = vshll.u32 %v1492_v23, %v1000_v55  ;;  %v1008_v18 = vor.u32 %v1007_v48, %v1006_v60 }
 0x219   :  { %v844_v47 = vsub.s32 0, %v2025_v10  ;;  %v735_v49 = vadd.s32 536870912, %v734_v34  ;;  %v1011_v54 = vor.u32 %v1010_v61, %v1009_v37  ;;  %v1016_v57 = vshrl.u32 %v1493_v30, %v1001_v4 }
 0x21a   :  { %v1002_v31 = vshrl.u32 %v1488_v14, %v1001_v4  ;;  %v1014_v52 = vor.u32 %v1013_v45, %v1012_v44  ;;  %vm1018_vm5 = vcmp.lt.s32.totalorder %v999_v9, 1  ;;  %vm1020_vm6 = vcmp.lt.s32.totalorder %v999_v9, 3 }
 0x21b   :  { %v1310_v58 = vmin.u32 %v844_v47, %v2025_v10  ;;  %v736_v12 = vshrl.u32 %v735_v49, 30  ;;  %v1017_v62 = vor.u32 %v1016_v57, %v1015_v46  ;;  %vm1021_vm7 = vcmp.lt.s32.totalorder %v999_v9, 4 }
 0x21c   :  { %v1022_v6 = vsel %vm1018_vm5, %v1002_v31, %v1005_v50  ;;  %v1023_v53 = vsel %vm1021_vm7, %v1011_v54, 2102212464  ;;  %v1026_v39 = vsel %vm1018_vm5, %v1005_v50, %v1008_v18  ;;  %v1027_v41 = vsel %vm1021_vm7, %v1014_v52, 920167782 }
 0x21d   :  { %v846_v0 = vclz %v1310_v58  ;;  %v737_v32 = vshll.u32 %v736_v12, 30  ;;  %v1024_v5 = vsel %vm1020_vm6, %v1008_v18, %v1023_v53  ;;  %v1030_v38 = vsel %vm1018_vm5, %v1008_v18, %v1011_v54 }
 0x21e   :  { %vm1019_vm8 = vcmp.lt.s32.totalorder %v999_v9, 2  ;;  %v1028_v22 = vsel %vm1020_vm6, %v1011_v54, %v1027_v41  ;;  %v1031_v25 = vsel %vm1021_vm7, %v1017_v62, 1326507024  ;;  %v892_v61 = vadd.s32 1, %v1313_v35 }
 0x21f   :  { %v1311_v40 = vadd.s32 4294967294, %v846_v0  ;;  %v2041_v33 = vsub.s32 %v734_v34, %v737_v32  ;;  %v1025_v55 = vsel %vm1019_vm8, %v1022_v6, %v1024_v5  ;;  %v1029_v29 = vsel %vm1019_vm8, %v1026_v39, %v1028_v22 }
 0x220   :  { %v1032_v2 = vsel %vm1020_vm6, %v1014_v52, %v1031_v25  ;;  %v2045_v4 = vmul.u32.u64.low %v2013_v3, %v1029_v29  ;;  %v2046_v36 = vmul.u32.u64.high %v2013_v3, %v1029_v29, %v2045_v4  ;;  %v834_v34 = vadd.s32 %v1970_v7, %v1967_v28 }
 0x221   :  { %vm1312_vm9 = vcmp.lt.s32.totalorder %v1311_v40, 0  ;;  %v1033_v42 = vsel %vm1019_vm8, %v1030_v38, %v1032_v2  ;;  %v740_v59 = vsub.s32 0, %v2041_v33  ;;  %v1041_v50 = vmul.u32 %v2013_v3, %v1025_v55 }
 0x222   :  { %v849_v60 = vsel %vm1312_vm9, 0, %v1311_v40  ;;  %v2051_v1 = vmul.u32.u64.low %v2013_v3, %v1033_v42  ;;  %v2052_v37 = vmul.u32.u64.high %v2013_v3, %v1033_v42, %v2051_v1  ;;  %v890_v45 = vor.u32 8388608, %v2017_v63 }
 0x223   :  { %v850_v48 = vsub.s32 32, %v849_v60  ;;  %v854_v9 = vsub.s32 4294967266, %v849_v60  ;;  %v851_v44 = vshll.u32 %v2025_v10, %v849_v60  ;;  %v1306_v47 = vmin.u32 %v740_v59, %v2041_v33 }
 0x224   :  { %v1044_v18 = vadd.s32 1, %v2046_v36  ;;  %vm893_vm10 = vcmp.gt.s32.totalorder %v892_v61, 0  ;;  %vm1043_vm11 = vc.u32 %v2052_v37, %v2045_v4  ;;  %v760_v7 = vsub.s32 4, %v736_v12 }
 0x225   :  { %v852_v46 = vshrl.u32 %v834_v34, %v850_v48  ;;  %v855_v49 = vadd.s32 127, %v854_v9  ;;  %v742_v54 = vclz %v1306_v47  ;;  %v894_v28 = vsel %vm893_vm10, %v892_v61, 0 }
 0x226   :  { %vm676_vm13 = vcmp.lt.s32.totalorder %v1909_v13, 0  ;;  %v1045_v10 = vsel %vm1043_vm11, %v1044_v18, %v2046_v36  ;;  %v730_v3 = vadd.s32 %v1997_v20, %v2003_v24  ;;  %v896_v31 = vand.u32 31, %v894_v28 }
 0x227   :  { %v853_v35 = vor.u32 %v852_v46, %v851_v44  ;;  %v856_v57 = vshll.u32 %v855_v49, 23  ;;  %v1307_v63 = vadd.s32 4294967294, %v742_v54  ;;  %v1046_v58 = vadd.s32 %v1045_v10, %v1041_v50 }
 0x228   :  { %v2067_v62 = vshrl.u32 %v894_v28, 5  ;;  %v2069_v0 = vshll.u32 %v890_v45, 8  ;;  %v864_v6 = vsub.s32 4, %v2008_v27  ;;  %v897_v39 = vsub.s32 32, %v896_v31 }
 0x229   :  { %v857_v52 = vor.u32 4788187, %v856_v57  ;;  %vm1308_vm14 = vcmp.lt.s32.totalorder %v1307_v63, 0  ;;  %v1047_v53 = vadd.s32 536870912, %v1046_v58  ;;  %v2074_v32 = vsel %vm676_vm13, %v760_v7, %v736_v12 }
 0x22a   :  { %v860_v41 = vcvt.s32.f32 %v853_v35  ;;  %v745_v20 = vsel %vm1308_vm14, 0, %v1307_v63  ;;  %v899_v24 = vshll.u32 %v1488_v14, %v896_v31  ;;  %v902_v25 = vshll.u32 %v1489_v16, %v896_v31 }
 0x22b   :  { %v858_v5 = vand.u32 2147483647, %v857_v52  ;;  %v746_v38 = vsub.s32 32, %v745_v20  ;;  %v750_v40 = vsub.s32 4294967266, %v745_v20  ;;  %v2077_v22 = vshrl.u32 %v1047_v53, 30 }
 0x22c   :  { %v747_v29 = vshll.u32 %v2041_v33, %v745_v20  ;;  %v900_v2 = vshrl.u32 %v1489_v16, %v897_v39  ;;  %v903_v42 = vshrl.u32 %v1490_v19, %v897_v39  ;;  %vm780_vm15 = vcmp.lt.s32.totalorder %v1907_v8, 0 }
 0x22d   :  { %v861_v55 = vmul.f32 %v860_v41, %v858_v5  ;;  %v748_v12 = vshrl.u32 %v730_v3, %v746_v38  ;;  %v751_v36 = vadd.s32 127, %v750_v40  ;;  %v1049_v60 = vshll.u32 %v2077_v22, 30 }
 0x22e   :  { %v906_v59 = vshrl.u32 %v1491_v21, %v897_v39  ;;  %v901_v1 = vor.u32 %v900_v2, %v899_v24  ;;  %v904_v34 = vor.u32 %v903_v42, %v902_v25  ;;  %v905_v48 = vshll.u32 %v1490_v19, %v896_v31 }
 0x22f   :  { %vm914_vm0 = vcmp.lt.s32.totalorder %v2067_v62, 1  ;;  %v749_v9 = vor.u32 %v748_v12, %v747_v29  ;;  %v752_v33 = vshll.u32 %v751_v36, 23  ;;  %v2088_v61 = vsub.s32 %v1046_v58, %v1049_v60 }
 0x230   :  { %v908_v44 = vshll.u32 %v1491_v21, %v896_v31  ;;  %v907_v47 = vor.u32 %v906_v59, %v905_v48  ;;  %v909_v50 = vshrl.u32 %v1492_v23, %v897_v39  ;;  %v911_v45 = vshll.u32 %v1492_v23, %v896_v31 }
 0x231   :  { %v912_v46 = vshrl.u32 %v1493_v30, %v897_v39  ;;  %v862_v49 = vxor.u32 2147483648, %v861_v55  ;;  %v753_v18 = vor.u32 4788187, %v752_v33  ;;  %v1052_v54 = vsub.s32 0, %v2088_v61 }
 0x232   :  { %v898_v28 = vshrl.u32 %v1488_v14, %v897_v39  ;;  %v756_v7 = vcvt.s32.f32 %v749_v9  ;;  %v910_v35 = vor.u32 %v909_v50, %v908_v44  ;;  %vm916_vm1 = vcmp.lt.s32.totalorder %v2067_v62, 3 }
 0x233   :  { %v913_v57 = vor.u32 %v912_v46, %v911_v45  ;;  %v754_v10 = vand.u32 2147483647, %v753_v18  ;;  %v1318_v3 = vmin.u32 %v1052_v54, %v2088_v61  ;;  %vm917_vm2 = vcmp.lt.s32.totalorder %v2067_v62, 4 }
 0x234   :  { %v922_v63 = vsel %vm914_vm0, %v901_v1, %v904_v34  ;;  %v919_v58 = vsel %vm917_vm2, %v907_v47, 2102212464  ;;  %v923_v31 = vsel %vm917_vm2, %v910_v35, 920167782  ;;  %v926_v52 = vsel %vm914_vm0, %v904_v34, %v907_v47 }
 0x235   :  { %v927_v53 = vsel %vm917_vm2, %v913_v57, 1326507024  ;;  %v757_v39 = vmul.f32 %v756_v7, %v754_v10  ;;  %v1054_v5 = vclz %v1318_v3  ;;  %vm915_vm3 = vcmp.lt.s32.totalorder %v2067_v62, 2 }
 0x236   :  { %v924_v41 = vsel %vm916_vm1, %v907_v47, %v923_v31  ;;  %v863_v20 = vsel %vm780_vm15, %v862_v49, %v861_v55  ;;  %v918_v24 = vsel %vm914_vm0, %v898_v28, %v901_v1  ;;  %v928_v40 = vsel %vm916_vm1, %v910_v35, %v927_v53 }
 0x237   :  { %v925_v38 = vsel %vm915_vm3, %v922_v63, %v924_v41  ;;  %v758_v25 = vxor.u32 2147483648, %v757_v39  ;;  %v1319_v29 = vadd.s32 4294967294, %v1054_v5  ;;  %v920_v2 = vsel %vm916_vm1, %v904_v34, %v919_v58 }
 0x238   :  { %v929_v42 = vsel %vm915_vm3, %v926_v52, %v928_v40  ;;  %v2123_v36 = vmul.u32.u64.low %v2069_v0, %v925_v38  ;;  %v2124_v60 = vmul.u32.u64.high %v2069_v0, %v925_v38, %v2123_v36  ;;  %vm2131_vm5 = vcmp.le.f32.partialorder %v674_v43, 0.7853982 }
 0x239   :  { %v2119_v12 = vmul.u32.u64.low %v2069_v0, %v929_v42  ;;  %v2120_v55 = vmul.u32.u64.high %v2069_v0, %v929_v42, %v2119_v12  ;;  %v759_v59 = vsel %vm676_vm13, %v758_v25, %v757_v39  ;;  %vm1320_vm4 = vcmp.lt.s32.totalorder %v1319_v29, 0 }
 0x23a   :  { %v1057_v34 = vsel %vm1320_vm4, 0, %v1319_v29  ;;  %v921_v48 = vsel %vm915_vm3, %v918_v24, %v920_v2  ;;  %v762_v9 = vsel %vm2131_vm5, %v1909_v13, %v759_v59  ;;  %vm2142_vm6 = vcmp.le.f32.partialorder %v778_v15, 0.7853982 }
 0x23b   :  { %v1062_v44 = vsub.s32 4294967266, %v1057_v34  ;;  %v763_v43 = vsel %vm2131_vm5, 0, %v2074_v32  ;;  %1443 = vcosq.f32 %v762_v9  ;;  %v866_v62 = vsel %vm2142_vm6, %v1907_v8, %v863_v20 }
 0x23c   :  { %vm939_vm7 = vc.u32 %v2120_v55, %v2123_v36  ;;  %v940_v47 = vadd.s32 1, %v2124_v60  ;;  %1445 = vsinq.f32 %v762_v9  ;;  %v865_v15 = vsel %vm780_vm15, %v864_v6, %v2008_v27 }
 0x23d   :  { %v1058_v50 = vsub.s32 32, %v1057_v34  ;;  %v1063_v45 = vadd.s32 127, %v1062_v44  ;;  %v937_v32 = vmul.u32 %v2069_v0, %v921_v48  ;;  %v1042_v46 = vadd.s32 %v2045_v4, %v2052_v37 }
 0x23e   :  { %v941_v49 = vsel %vm939_vm7, %v940_v47, %v2124_v60  ;;  %v767_v18 = vadd.s32 3, %v763_v43  ;;  %1447 = vcosq.f32 %v866_v62  ;;  %v867_v7 = vsel %vm2142_vm6, 0, %v865_v15 }
 0x23f   :  { %v1064_v54 = vshll.u32 %v1063_v45, 23  ;;  %v942_v28 = vadd.s32 %v941_v49, %v937_v32  ;;  %1449 = vsinq.f32 %v866_v62  ;;  %v1060_v35 = vshrl.u32 %v1042_v46, %v1058_v50 }
 0x240   :  { %vm1495_vm8 = vmmov 0   ;;  %v1496_v27 = vmov 0.0   ;;  %v871_v6 = vadd.s32 3, %v867_v7  ;;  %v1059_v0 = vshll.u32 %v2088_v61, %v1057_v34 }
 0x241   :  { %v943_v57 = vadd.s32 536870912, %v942_v28  ;;  %1361 = vmatprep.mubr.msk.f32.mxu1 %vm1495_vm8, %v1496_v27  ;;  %v1065_v10 = vor.u32 4788187, %v1064_v54  ;;  %v768_v37 = vand.u32 3, %v767_v18  ;;  %vm766_vm13 = vweird.f32 %v1909_v13 }
 0x242   :  { %v1061_v63 = vor.u32 %v1060_v35, %v1059_v0  ;;  %v872_v53 = vand.u32 3, %v871_v6  ;;  %vm870_vm1 = vweird.f32 %v1907_v8  ;;  %vm988_vm3 = vcmp.lt.s32.totalorder %v1917_v17, 0 }
 0x243   :  { %v2167_v4 = vshrl.u32 %v943_v57, 30  ;;  %v1066_v39 = vand.u32 2147483647, %v1065_v10  ;;  %vm773_vm9 = vcmp.eq.s32.totalorder %v768_v37, 2  ;;  %vm769_vm10 = vcmp.lt.s32.totalorder %v768_v37, 2 }
 0x244   :  { %vm770_vm11 = vcmp.eq.s32.totalorder %v768_v37, 0  ;;  %v1068_v38 = vcvt.s32.f32 %v1061_v63  ;;  %vm877_vm14 = vcmp.eq.s32.totalorder %v872_v53, 2  ;;  %vm874_vm15 = vcmp.eq.s32.totalorder %v872_v53, 0 }
 0x245   :  { %v1444_v3 = vpop.eup %1443  ;;  %v945_v58 = vshll.u32 %v2167_v4, 30  ;;  %vm873_vm0 = vcmp.lt.s32.totalorder %v872_v53, 2  ;;  %v938_v15 = vadd.s32 %v2123_v36, %v2120_v55  ;;  %vm2180_vm4 = vcmp.le.f32.partialorder %v986_v26, 0.7853982 }
 0x246   :  { %v1446_v31 = vpop.eup %1445  ;;  %v774_v52 = vxor.u32 2147483648, %v1444_v3  ;;  %v1069_v12 = vmul.f32 %v1068_v38, %v1066_v39  ;;  %v968_v57 = vsub.s32 4, %v2167_v4  ;;  %vm884_vm5 = vcmp.lt.s32.totalorder %v1922_v51, 0 }
 0x247   :  { %v946_v5 = vsub.s32 %v942_v28, %v945_v58  ;;  %v771_v41 = vxor.u32 2147483648, %v1446_v31  ;;  %v1072_v28 = vsub.s32 4, %v2077_v22  ;;  %vm883_vm6 = vcmp.le.f32.partialorder %v882_v11, 0.7853982 }
 0x248   :  { %v1448_v20 = vpop.eup %1447  ;;  %v775_v24 = vsel %vm773_vm9, %v774_v52, %v1446_v31  ;;  %v1070_v44 = vxor.u32 2147483648, %v1069_v12  ;;  %v969_v10 = vsel %vm884_vm5, %v968_v57, %v2167_v4 }
 0x249   :  { %v1450_v61 = vpop.eup %1449  ;;  %v948_v40 = vsub.s32 0, %v946_v5  ;;  %v772_v25 = vsel %vm770_vm11, %v1444_v3, %v771_v41  ;;  %v878_v29 = vxor.u32 2147483648, %v1448_v20  ;;  %v1073_v26 = vsel %vm988_vm3, %v1072_v28, %v2077_v22 }
 0x24a   :  { %v776_v2 = vsel %vm769_vm10, %v772_v25, %v775_v24  ;;  %v875_v42 = vxor.u32 2147483648, %v1450_v61  ;;  %v1071_v47 = vsel %vm988_vm3, %v1070_v44, %v1069_v12  ;;  %v1075_v6 = vsel %vm2180_vm4, 0, %v1073_v26 }
 0x24b   :  { %v1314_v60 = vmin.u32 %v948_v40, %v946_v5  ;;  %v879_v59 = vsel %vm877_vm14, %v878_v29, %v1450_v61  ;;  %v777_v1 = vsel %vm766_vm13, nan, %v776_v2  ;;  %v1079_v3 = vadd.s32 3, %v1075_v6 }
 0x24c   :  { %v876_v34 = vsel %vm874_vm15, %v1448_v20, %v875_v42  ;;  %v971_v58 = vsel %vm883_vm6, 0, %v969_v10  ;;  %vm1078_vm13 = vweird.f32 %v1917_v17  ;;  %vm974_vm15 = vweird.f32 %v1922_v51 }
 0x24d   :  { %v950_v48 = vclz %v1314_v60  ;;  %v880_v9 = vsel %vm873_vm0, %v876_v34, %v879_v59  ;;  %v1080_v31 = vand.u32 3, %v1079_v3  ;;  %v975_v52 = vadd.s32 3, %v971_v58  ;;  %v1090_v60 = vld [vmem:[%s2256_s7] sm:$0x1]  ;;  %s1497_s7 = smov [#allocation2]  }
 0x24e   :  { %v881_v33 = vsel %vm870_vm1, nan, %v880_v9  ;;  %s1275_s22 = sshll.u32 %s1497_s7, 4  ;;  %s1276_s22 = int_to_ptr.vmem [resolvable:$true] %s1275_s22 }
 0x24f   :  { %v1315_v43 = vadd.s32 4294967294, %v950_v48  ;;  %v1373_v62 = vpack.c.bf16 %v881_v33, %v777_v1  ;;  %vm1082_vm7 = vcmp.eq.s32.totalorder %v1080_v31, 0  ;;  %vm1085_vm8 = vcmp.eq.s32.totalorder %v1080_v31, 2  ;;  %s1463_s23 = scalar_lea.vmem %s1276_s22, 16  ;;  %s1467_s24 = scalar_lea.vmem %s1276_s22, 32 }
 0x250   :  { %vm1081_vm9 = vcmp.lt.s32.totalorder %v1080_v31, 2  ;;  %p1464_p0 = scmp.ne.s32.totalorder %s1276_s22, %s1463_s23  ;;  %p1468_p1 = scmp.lt.s32.totalorder %s1276_s22, %s1276_s22 }
 0x251   :  { %vm1316_vm2 = vcmp.lt.s32.totalorder %v1315_v43, 0  ;;  %1374 = vmatpush3.bf16.msra.mxu1 %v1373_v62  ;;  %p1469_p2 = scmp.lt.s32.totalorder %s1467_s24, %s1463_s23 }
 0x252   :  { %v953_v13 = vsel %vm1316_vm2, 0, %v1315_v43  ;;  %1375 = vmatprep.subr.bf16.mxu1 %v1494_v56  ;;  %v1074_v56 = vsel %vm2180_vm4, %v1917_v17, %v1071_v47 }
 0x253   :  { %v954_v50 = vsub.s32 32, %v953_v13  ;;  %v958_v8 = vsub.s32 4294967266, %v953_v13  ;;  %v955_v32 = vshll.u32 %v946_v5, %v953_v13  ;;  %1451 = vcosq.f32 %v1074_v56  ;;  %p1470_p3 = por %p1469_p2, %p1468_p1 }
 0x254   :  { %1453 = vsinq.f32 %v1074_v56  ;;  %v976_v5 = vand.u32 3, %v975_v52 }
 0x255   :  { %v956_v46 = vshrl.u32 %v938_v15, %v954_v50  ;;  %v959_v49 = vadd.s32 127, %v958_v8  ;;  %p1471_p4 = pnand %p1470_p3, %p1464_p0 }
 0x256   :  { %vm981_vm10 = vcmp.eq.s32.totalorder %v976_v5, 2  ;;  %vm978_vm11 = vcmp.eq.s32.totalorder %v976_v5, 0  ;;  %vm977_vm14 = vcmp.lt.s32.totalorder %v976_v5, 2 }
 0x257   :  { %v957_v18 = vor.u32 %v956_v46, %v955_v32  ;;  %v960_v54 = vshll.u32 %v959_v49, 23 }
 0x259   :  { %v961_v55 = vor.u32 4788187, %v960_v54  ;;  %v964_v7 = vcvt.s32.f32 %v957_v18 }
 0x25b   :  { %v962_v36 = vand.u32 2147483647, %v961_v55 }
 0x25d   :  { %v965_v35 = vmul.f32 %v964_v7, %v962_v36  ;;  %v1452_v63 = vpop.eup %1451 }
 0x25e   :  { %v1454_v22 = vpop.eup %1453  ;;  %v1086_v39 = vxor.u32 2147483648, %v1452_v63 }
 0x25f   :  { %v966_v27 = vxor.u32 2147483648, %v965_v35  ;;  %v1083_v53 = vxor.u32 2147483648, %v1454_v22 }
 0x260   :  { %v1087_v11 = vsel %vm1085_vm8, %v1086_v39, %v1454_v22 }
 0x261   :  { %v967_v0 = vsel %vm884_vm5, %v966_v27, %v965_v35  ;;  %v1084_v41 = vsel %vm1082_vm7, %v1452_v63, %v1083_v53 }
 0x262   :  { %v970_v37 = vsel %vm883_vm6, %v1922_v51, %v967_v0  ;;  %v1088_v61 = vsel %vm1081_vm9, %v1084_v41, %v1087_v11 }
 0x263   :  { %1455 = vcosq.f32 %v970_v37  ;;  %v1089_v29 = vsel %vm1078_vm13, nan, %v1088_v61 }
 0x264   :  { %1457 = vsinq.f32 %v970_v37 }
 0x26d   :  { %v1456_v20 = vpop.eup %1455 }
 0x26e   :  { %v1458_v4 = vpop.eup %1457  ;;  %v982_v24 = vxor.u32 2147483648, %v1456_v20 }
 0x26f   :  { %v979_v38 = vxor.u32 2147483648, %v1458_v4 }
 0x270   :  { %v983_v40 = vsel %vm981_vm10, %v982_v24, %v1458_v4 }
 0x271   :  { %v980_v25 = vsel %vm978_vm11, %v1456_v20, %v979_v38 }
 0x272   :  { %v984_v2 = vsel %vm977_vm14, %v980_v25, %v983_v40 }
 0x273   :  { %v985_v42 = vsel %vm974_vm15, nan, %v984_v2 }
 0x274   :  { %v1376_v12 = vpack.c.bf16 %v1089_v29, %v985_v42 }
 0x276   :  { %1377 = vmatpush3.bf16.msra.mxu1 %v1376_v12 }
 0x279   :  { %1362 = vmatmul.mubr.msk.f32.vlgmr.msra.gmra.mrb[0].mxu1 %vm576_vm12, %v1090_v60 }
 0x34c   :  { %v2205_v59 = vpop.f32.mrb[0].mxu1 }
 0x34d   :  { %v1167_v1 = vand.u32 2139095040, %v2205_v59  ;;  %v1363_v17 = vpop.f32.mrb[1].mxu1  ;;  %v1164_v51 = vand.u32 2147483647, %v2205_v59  ;;  %vm1166_vm6 = vcmp.lt.s32.totalorder %v2205_v59, 0  ;;  %vm1256_vm11 = vweird.f32 %v2205_v59 }
 0x34f   :  { %v1168_v34 = vshrl.u32 %v1167_v1, 23  ;;  %v1171_v43 = vand.u32 8388607, %v1164_v51  ;;  %vm1165_vm7 = vcmp.le.f32.partialorder %v1164_v51, 0.7853982 }
 0x351   :  { %v1322_v48 = vadd.s32 4294967169, %v1168_v34  ;;  %v1172_v54 = vor.u32 8388608, %v1171_v43 }
 0x353   :  { %v1174_v9 = vadd.s32 1, %v1322_v48 }
 0x355   :  { %vm1175_vm0 = vcmp.gt.s32.totalorder %v1174_v9, 0 }
 0x356   :  { %v1176_v33 = vsel %vm1175_vm0, %v1174_v9, 0 }
 0x357   :  { %v1178_v44 = vand.u32 31, %v1176_v33  ;;  %v1177_v13 = vshrl.u32 %v1176_v33, 5 }
 0x359   :  { %v1179_v62 = vsub.s32 32, %v1178_v44  ;;  %v1181_v47 = vshll.u32 %v1488_v14, %v1178_v44  ;;  %v1184_v15 = vshll.u32 %v1489_v16, %v1178_v44  ;;  %v1187_v45 = vshll.u32 %v1490_v19, %v1178_v44 }
 0x35a   :  { %v1190_v46 = vshll.u32 %v1491_v21, %v1178_v44  ;;  %v1193_v56 = vshll.u32 %v1492_v23, %v1178_v44  ;;  %vm1196_vm12 = vcmp.lt.s32.totalorder %v1177_v13, 1  ;;  %vm1199_vm1 = vcmp.lt.s32.totalorder %v1177_v13, 4 }
 0x35b   :  { %v1182_v50 = vshrl.u32 %v1489_v16, %v1179_v62  ;;  %v1185_v8 = vshrl.u32 %v1490_v19, %v1179_v62  ;;  %v1188_v32 = vshrl.u32 %v1491_v21, %v1179_v62  ;;  %v1191_v49 = vshrl.u32 %v1492_v23, %v1179_v62 }
 0x35c   :  { %v1194_v18 = vshrl.u32 %v1493_v30, %v1179_v62  ;;  %v1180_v57 = vshrl.u32 %v1488_v14, %v1179_v62  ;;  %vm1198_vm2 = vcmp.lt.s32.totalorder %v1177_v13, 3  ;;  %vm1197_vm3 = vcmp.lt.s32.totalorder %v1177_v13, 2 }
 0x35d   :  { %v1183_v28 = vor.u32 %v1182_v50, %v1181_v47  ;;  %v1186_v55 = vor.u32 %v1185_v8, %v1184_v15  ;;  %v1189_v36 = vor.u32 %v1188_v32, %v1187_v45  ;;  %v1192_v7 = vor.u32 %v1191_v49, %v1190_v46 }
 0x35e   :  { %v1195_v16 = vor.u32 %v1194_v18, %v1193_v56  ;;  %v1212_v30 = vshll.u32 %v1172_v54, 8 }
 0x35f   :  { %v1201_v26 = vsel %vm1199_vm1, %v1189_v36, 2102212464  ;;  %v1204_v19 = vsel %vm1196_vm12, %v1183_v28, %v1186_v55  ;;  %v1208_v35 = vsel %vm1196_vm12, %v1186_v55, %v1189_v36  ;;  %v1205_v21 = vsel %vm1199_vm1, %v1192_v7, 920167782 }
 0x360   :  { %v1209_v27 = vsel %vm1199_vm1, %v1195_v16, 1326507024  ;;  %v1206_v23 = vsel %vm1198_vm2, %v1189_v36, %v1205_v21  ;;  %v1200_v0 = vsel %vm1196_vm12, %v1180_v57, %v1183_v28  ;;  %v1202_v10 = vsel %vm1198_vm2, %v1186_v55, %v1201_v26 }
 0x361   :  { %v1210_v6 = vsel %vm1198_vm2, %v1192_v7, %v1209_v27  ;;  %v1207_v37 = vsel %vm1197_vm3, %v1204_v19, %v1206_v23  ;;  %v1203_v52 = vsel %vm1197_vm3, %v1200_v0, %v1202_v10 }
 0x362   :  { %v1211_v3 = vsel %vm1197_vm3, %v1208_v35, %v1210_v6  ;;  %v2225_v58 = vmul.u32.u64.low %v1212_v30, %v1207_v37  ;;  %v2226_v31 = vmul.u32.u64.high %v1212_v30, %v1207_v37, %v2225_v58  ;;  %v1219_v53 = vmul.u32 %v1212_v30, %v1203_v52 }
 0x363   :  { %v2222_v63 = vmul.u32.u64.low %v1212_v30, %v1211_v3  ;;  %v2223_v22 = vmul.u32.u64.high %v1212_v30, %v1211_v3, %v2222_v63 }
 0x364   :  { %v1222_v14 = vadd.s32 1, %v2226_v31 }
 0x365   :  { %vm1221_vm4 = vc.u32 %v2223_v22, %v2225_v58  ;;  %v1220_v29 = vadd.s32 %v2225_v58, %v2223_v22 }
 0x366   :  { %v1223_v39 = vsel %vm1221_vm4, %v1222_v14, %v2226_v31 }
 0x367   :  { %v1224_v5 = vadd.s32 %v1223_v39, %v1219_v53 }
 0x369   :  { %v1225_v41 = vadd.s32 536870912, %v1224_v5 }
 0x36b   :  { %v1226_v11 = vshrl.u32 %v1225_v41, 30 }
 0x36d   :  { %v1227_v20 = vshll.u32 %v1226_v11, 30  ;;  %v1250_v43 = vsub.s32 4, %v1226_v11 }
 0x36f   :  { %v1228_v4 = vsub.s32 %v1224_v5, %v1227_v20  ;;  %v1251_v47 = vsel %vm1166_vm6, %v1250_v43, %v1226_v11 }
 0x370   :  { %v1253_v50 = vsel %vm1165_vm7, 0, %v1251_v47 }
 0x371   :  { %v1230_v24 = vsub.s32 0, %v1228_v4  ;;  %v1257_v8 = vadd.s32 3, %v1253_v50 }
 0x373   :  { %v1323_v61 = vmin.u32 %v1230_v24, %v1228_v4  ;;  %v1258_v45 = vand.u32 3, %v1257_v8 }
 0x375   :  { %v1232_v38 = vclz %v1323_v61  ;;  %vm1263_vm8 = vcmp.eq.s32.totalorder %v1258_v45, 2  ;;  %vm1260_vm9 = vcmp.eq.s32.totalorder %v1258_v45, 0  ;;  %vm1259_vm10 = vcmp.lt.s32.totalorder %v1258_v45, 2 }
 0x377   :  { %v1324_v40 = vadd.s32 4294967294, %v1232_v38 }
 0x379   :  { %vm1325_vm5 = vcmp.lt.s32.totalorder %v1324_v40, 0 }
 0x37a   :  { %v1235_v25 = vsel %vm1325_vm5, 0, %v1324_v40 }
 0x37b   :  { %v1236_v2 = vsub.s32 32, %v1235_v25  ;;  %v1240_v42 = vsub.s32 4294967266, %v1235_v25  ;;  %v1237_v12 = vshll.u32 %v1228_v4, %v1235_v25 }
 0x37d   :  { %v1238_v60 = vshrl.u32 %v1220_v29, %v1236_v2  ;;  %v1241_v1 = vadd.s32 127, %v1240_v42 }
 0x37f   :  { %v1239_v17 = vor.u32 %v1238_v60, %v1237_v12  ;;  %v1242_v34 = vshll.u32 %v1241_v1, 23 }
 0x381   :  { %v1243_v48 = vor.u32 4788187, %v1242_v34  ;;  %v1246_v33 = vcvt.s32.f32 %v1239_v17 }
 0x383   :  { %v1244_v9 = vand.u32 2147483647, %v1243_v48 }
 0x385   :  { %v1247_v44 = vmul.f32 %v1246_v33, %v1244_v9 }
 0x387   :  { %v1248_v62 = vxor.u32 2147483648, %v1247_v44 }
 0x389   :  { %v1249_v13 = vsel %vm1166_vm6, %v1248_v62, %v1247_v44 }
 0x38a   :  { %v1252_v15 = vsel %vm1165_vm7, %v2205_v59, %v1249_v13 }
 0x38b   :  { %1459 = vcosq.f32 %v1252_v15 }
 0x38c   :  { %1461 = vsinq.f32 %v1252_v15 }
 0x395   :  { %v1460_v32 = vpop.eup %1459 }
 0x396   :  { %v1462_v46 = vpop.eup %1461  ;;  %v1264_v49 = vxor.u32 2147483648, %v1460_v32 }
 0x397   :  { %v1261_v56 = vxor.u32 2147483648, %v1462_v46 }
 0x398   :  { %v1265_v18 = vsel %vm1263_vm8, %v1264_v49, %v1462_v46 }
 0x399   :  { %v1262_v51 = vsel %vm1260_vm9, %v1460_v32, %v1261_v56 }
 0x39a   :  { %v1266_v54 = vsel %vm1259_vm10, %v1262_v51, %v1265_v18 }
 0x39b   :  { %v1267_v28 = vsel %vm1256_vm11, nan, %v1266_v54 }
 0x39c   :  { %1268 = vst [vmem:[#allocation2] sm:$0x1] %v1267_v28 }
 0x39d   :  { %1474 = shalt.err (!%p1471_p4)
}
 0x39e   :  { %s1475_s26 = scalar_lea.hbm %s2257_s8, 16 }
 0x39f   :  { %p1476_p5 = scmp.ne.s32.totalorder %s2257_s8, %s1475_s26  ;;  %p1479_p6 = scmp.lt.u32.totalorder %s1475_s26, %s2257_s8 }
 0x3a1   :  { %p1481_p7 = pnand %p1479_p6, %p1476_p5 }
 0x3a3   :  { %1484 = shalt.err (!%p1481_p7)
}
 0x3a4   :  { %1278 = dma.vmem_to_hbm [thread:$0]  %s1276_s22, 16, %s2257_s8, [#allocation3]  }
 0x3a5   :  { %1485 = dma.done.wait [#allocation3], 16  }
 0x3a6   :  { %1486 = vsyncadd [#allocation3], 4294967280 }
 0x3a7   :  { %1282 = vsyncpa [#allocation3], 1 }

</bundles_post_ra>
